<compile_context>
chip_gen: v5e
topology: v5e:2x2
jax: 0.10.0
libtpu: 0.0.40
codegen_flags: <defaults>
</compile_context>

<pallas_src>
import functools
import math

import jax
import jax.numpy as jnp
from jax import lax
from jax.experimental import pallas as pl
from jax.experimental.pallas import tpu as pltpu

DILATION = 16      # module hard-codes dilation/padding 16
EPS = 1e-3         # BatchNorm2d(eps=0.001)
LANES = 128


# --------------------------------------------------------------------------- pass 1
def _conv_stats_kernel(xp_ref, xc_ref, xn_ref, w31_ref, b31_ref, w13_ref, b13_ref,
                       z_ref, stats_ref, *, TH, W, CP, SHIFTB, HB):
    """Per (n, h-block) tile: z = conv1x3(relu(conv3x1(x))) + per-channel sum/sumsq."""
    hb = pl.program_id(1)
    R = TH * W

    # halo validity masks (taps at h-16 / h+16 are zero-padded outside the image)
    prev_ok = (hb >= SHIFTB).astype(jnp.float32)
    next_ok = (hb < HB - SHIFTB).astype(jnp.float32)

    xp = xp_ref[...].reshape(R, CP) * prev_ok          # rows at h - 16
    xc = xc_ref[...].reshape(R, CP)                    # rows at h
    xn = xn_ref[...].reshape(R, CP) * next_ok          # rows at h + 16

    # ---- conv3x1: three dilated taps fused into one (R, 3C) @ (3C, C) matmul
    xcat = jnp.concatenate([xp, xc, xn], axis=-1)
    y = jnp.dot(xcat, w31_ref[...], preferred_element_type=jnp.float32)
    y = jnp.maximum(y + b31_ref[...], 0.0)             # bias + ReLU

    # ---- conv1x3: shift along W inside the tile (zero halo), fuse taps the same way
    y3 = y.reshape(TH, W, CP)
    zpad = jnp.zeros((TH, DILATION, CP), jnp.float32)
    ypad = jnp.concatenate([zpad, y3, zpad], axis=1)   # (TH, W + 32, CP)
    taps = [ypad[:, k * DILATION:k * DILATION + W, :].reshape(R, CP) for k in range(3)]
    ycat = jnp.concatenate(taps, axis=-1)              # (R, 3*CP)
    z = jnp.dot(ycat, w13_ref[...], preferred_element_type=jnp.float32) + b13_ref[...]

    # ---- outputs: conv result + per-tile BN partial statistics
    z_ref[...] = z.reshape(1, TH, W, CP)
    zsum = jnp.sum(z, axis=0, keepdims=True)           # (1, CP)
    zsq = jnp.sum(z * z, axis=0, keepdims=True)        # (1, CP)
    stats_ref[...] = jnp.concatenate([zsum, zsq], axis=0).reshape(1, 2, CP)


# --------------------------------------------------------------------------- pass 2
def _bn_residual_kernel(z_ref, x_ref, scale_ref, shift_ref, o_ref):
    """out = z * scale + shift + x  (BN affine with batch stats folded in + residual)."""
    o_ref[...] = z_ref[...] * scale_ref[...] + shift_ref[...] + x_ref[...]


# --------------------------------------------------------------------------- wrapper
def non_bottleneck_1d_r5(x_nchw, params, dropprob=0.0):
    # TODO(synk): Dropout2d only fires when dropprob != 0; this instantiation uses 0.0
    # (forward skips it). Nonzero p would need pltpu.prng_seed/prng_random_bits channel masks.
    assert dropprob == 0.0, "dropout path not implemented"

    N, C, H, W = x_nchw.shape
    CP = ((C + LANES - 1) // LANES) * LANES            # lane-pad channels to 128
    TH = math.gcd(DILATION, H)                         # rows of H per tile (divides 16 & H)
    HB = H // TH                                       # number of H blocks
    SHIFTB = DILATION // TH                            # +-16 rows == +-SHIFTB blocks

    # NCHW -> NHWC (channel-last, lane dim), zero-pad channels
    x = jnp.transpose(x_nchw, (0, 2, 3, 1)).astype(jnp.float32)
    x = jnp.pad(x, ((0, 0), (0, 0), (0, 0), (0, CP - C)))

    # PyTorch conv weights (Cout, Cin, kh, kw) -> stacked (3*CP, CP): rows = [tap0; tap1; tap2]
    def stack_taps(wt):                                # wt: (3, Cin, Cout)
        w = jnp.zeros((3, CP, CP), jnp.float32).at[:, :C, :C].set(wt)
        return w.reshape(3 * CP, CP)

    w31s = stack_taps(jnp.transpose(params["w31"][:, :, :, 0], (2, 1, 0)).astype(jnp.float32))
    w13s = stack_taps(jnp.transpose(params["w13"][:, :, 0, :], (2, 1, 0)).astype(jnp.float32))

    def pad_vec(v):
        return jnp.zeros((1, CP), jnp.float32).at[0, :C].set(v.astype(jnp.float32))

    b31, b13 = pad_vec(params["b31"]), pad_vec(params["b13"])
    gamma, beta = pad_vec(params["gamma"]), pad_vec(params["beta"])

    cparams = pltpu.CompilerParams(
        dimension_semantics=("parallel", "parallel"),   # megacore sharding on v7x
        vmem_limit_bytes=64 * 1024 * 1024,
    )

    row_block = pl.BlockSpec((1, TH, W, CP), lambda n, hb: (n, hb, 0, 0))
    prev_block = pl.BlockSpec((1, TH, W, CP),
                              lambda n, hb: (n, jnp.maximum(hb - SHIFTB, 0), 0, 0))
    next_block = pl.BlockSpec((1, TH, W, CP),
                              lambda n, hb: (n, jnp.minimum(hb + SHIFTB, HB - 1), 0, 0))
    full_w = pl.BlockSpec((3 * CP, CP), lambda n, hb: (0, 0))
    full_v = pl.BlockSpec((1, CP), lambda n, hb: (0, 0))

    kernel1 = functools.partial(_conv_stats_kernel, TH=TH, W=W, CP=CP, SHIFTB=SHIFTB, HB=HB)

    # ---- pass 1: convs + ReLU + per-tile BN partial sums
    z_pad, partials = pl.pallas_call(
        kernel1,
        out_shape=(jax.ShapeDtypeStruct((N, H, W, CP), jnp.float32),
                   jax.ShapeDtypeStruct((N * HB, 2, CP), jnp.float32)),
        grid_spec=pltpu.PrefetchScalarGridSpec(
            num_scalar_prefetch=0,
            grid=(N, HB),
            in_specs=[prev_block, row_block, next_block, full_w, full_v, full_w, full_v],
            out_specs=[row_block,
                       pl.BlockSpec((1, 2, CP), lambda n, hb: (n * HB + hb, 0, 0))],
        ),
        compiler_params=cparams,
    )(x, x, x, w31s, b31, w13s, b13)

    # ---- finalize batch statistics (tiny reduction) and fold into scale/shift
    totals = jnp.sum(partials, axis=0)                  # (2, CP)
    cnt = float(N * H * W)
    mean = totals[0] / cnt
    var = jnp.maximum(totals[1] / cnt - mean * mean, 0.0)
    inv = lax.rsqrt(var + EPS)
    scale = (gamma[0] * inv).reshape(1, CP)
    shift = (beta[0] - mean * gamma[0] * inv).reshape(1, CP)

    # ---- pass 2: apply BN + residual, same tiling
    out_pad = pl.pallas_call(
        _bn_residual_kernel,
        out_shape=jax.ShapeDtypeStruct((N, H, W, CP), jnp.float32),
        grid_spec=pltpu.PrefetchScalarGridSpec(
            num_scalar_prefetch=0,
            grid=(N, HB),
            in_specs=[row_block, row_block, full_v, full_v],
            out_specs=row_block,
        ),
        compiler_params=cparams,
    )(z_pad, x, scale, shift)

    out = out_pad[:, :, :, :C]
    return jnp.transpose(out, (0, 3, 1, 2))             # NHWC -> NCHW


# --------------------------------------------------------------------------- reference
def _reference(x, params):
    """Pure-JAX reference matching the PyTorch forward (training-mode BN)."""
    y = lax.conv_general_dilated(
        x, params["w31"], window_strides=(1, 1), padding=((16, 16), (0, 0)),
        rhs_dilation=(16, 1), dimension_numbers=("NCHW", "OIHW", "NCHW"))
    y = y + params["b31"][None, :, None, None]
    y = jnp.maximum(y, 0.0)
    z = lax.conv_general_dilated(
        y, params["w13"], window_strides=(1, 1), padding=((0, 0), (16, 16)),
        rhs_dilation=(1, 16), dimension_numbers=("NCHW", "OIHW", "NCHW"))
    z = z + params["b13"][None, :, None, None]
    mean = jnp.mean(z, axis=(0, 2, 3), keepdims=True)
    var = jnp.mean((z - mean) ** 2, axis=(0, 2, 3), keepdims=True)
    z = (z - mean) / jnp.sqrt(var + EPS)
    z = z * params["gamma"][None, :, None, None] + params["beta"][None, :, None, None]
    return z + x


if __name__ == "__main__":
    N, C, H, W = 2, 4, 16, 16
    key = jax.random.PRNGKey(0)
    k_x, k_w31, k_b31, k_w13, k_b13, k_g, k_b = jax.random.split(key, 7)

    x = jax.random.normal(k_x, (N, C, H, W), dtype=jnp.float32)
    params = {
        "w31": 0.2 * jax.random.normal(k_w31, (C, C, 3, 1), dtype=jnp.float32),
        "b31": 0.1 * jax.random.normal(k_b31, (C,), dtype=jnp.float32),
        "w13": 0.2 * jax.random.normal(k_w13, (C, C, 1, 3), dtype=jnp.float32),
        "b13": 0.1 * jax.random.normal(k_b13, (C,), dtype=jnp.float32),
        "gamma": 1.0 + 0.1 * jax.random.normal(k_g, (C,), dtype=jnp.float32),
        "beta": 0.1 * jax.random.normal(k_b, (C,), dtype=jnp.float32),
    }

    out = jax.block_until_ready(non_bottleneck_1d_r5(x, params, dropprob=0.0))
    ref = jax.block_until_ready(_reference(x, params))

    assert out.shape == (N, C, H, W) and out.dtype == jnp.float32
    assert jnp.allclose(out, ref, atol=1e-4, rtol=1e-4), float(jnp.max(jnp.abs(out - ref)))
    print("KERNEL_OK")
</pallas_src>

<mosaic_0001>
module attributes {stable_mosaic.version = 11 : i64} {
  func.func @_conv_stats_kernel(%arg0: i32, %arg1: i32, %arg2: memref<1x16x16x128xf32, #tpu.memory_space<vmem>>, %arg3: memref<1x16x16x128xf32, #tpu.memory_space<vmem>>, %arg4: memref<1x16x16x128xf32, #tpu.memory_space<vmem>>, %arg5: memref<384x128xf32, #tpu.memory_space<vmem>>, %arg6: memref<1x128xf32, #tpu.memory_space<vmem>>, %arg7: memref<384x128xf32, #tpu.memory_space<vmem>>, %arg8: memref<1x128xf32, #tpu.memory_space<vmem>>, %arg9: memref<1x16x16x128xf32, #tpu.memory_space<vmem>>, %arg10: memref<1x2x128xf32, #tpu.memory_space<vmem>>) attributes {dimension_semantics = [#tpu.dimension_semantics<parallel>, #tpu.dimension_semantics<parallel>], iteration_bounds = array<i64: 2, 1>, scalar_prefetch = 0 : i64, scratch_operands = 0 : i64, tpu.core_type = #tpu.core_type<tc>, window_params = [{transform_indices = @transform_0, window_bounds = array<i64: 1, 16, 16, 128>}, {transform_indices = @transform_1, window_bounds = array<i64: 1, 16, 16, 128>}, {transform_indices = @transform_2, window_bounds = array<i64: 1, 16, 16, 128>}, {pipeline_mode = #tpu.pipeline_mode<synchronous>, transform_indices = @transform_3, window_bounds = array<i64: 384, 128>}, {pipeline_mode = #tpu.pipeline_mode<synchronous>, transform_indices = @transform_4, window_bounds = array<i64: 1, 128>}, {pipeline_mode = #tpu.pipeline_mode<synchronous>, transform_indices = @transform_5, window_bounds = array<i64: 384, 128>}, {pipeline_mode = #tpu.pipeline_mode<synchronous>, transform_indices = @transform_6, window_bounds = array<i64: 1, 128>}, {transform_indices = @transform_7, window_bounds = array<i64: 1, 16, 16, 128>}, {transform_indices = @transform_8, window_bounds = array<i64: 1, 2, 128>}]} {
    %c1_i32 = arith.constant 1 : i32
    %0 = arith.cmpi sge, %arg1, %c1_i32 : i32
    %1 = arith.extui %0 : i1 to i32
    %2 = arith.sitofp %1 : i32 to f32
    %c0_i32 = arith.constant 0 : i32
    %3 = arith.cmpi slt, %arg1, %c0_i32 : i32
    %4 = arith.extui %3 : i1 to i32
    %5 = arith.sitofp %4 : i32 to f32
    %c0 = arith.constant 0 : index
    %c0_0 = arith.constant 0 : index
    %c0_1 = arith.constant 0 : index
    %c0_2 = arith.constant 0 : index
    %6 = vector.load %arg2[%c0, %c0_0, %c0_1, %c0_2] : memref<1x16x16x128xf32, #tpu.memory_space<vmem>>, vector<1x16x16x128xf32>
    %7 = vector.shape_cast %6 : vector<1x16x16x128xf32> to vector<256x128xf32>
    %8 = vector.broadcast %2 : f32 to vector<256x128xf32>
    %9 = arith.mulf %7, %8 : vector<256x128xf32>
    %c0_3 = arith.constant 0 : index
    %c0_4 = arith.constant 0 : index
    %c0_5 = arith.constant 0 : index
    %c0_6 = arith.constant 0 : index
    %10 = vector.load %arg3[%c0_3, %c0_4, %c0_5, %c0_6] : memref<1x16x16x128xf32, #tpu.memory_space<vmem>>, vector<1x16x16x128xf32>
    %11 = vector.shape_cast %10 : vector<1x16x16x128xf32> to vector<256x128xf32>
    %c0_7 = arith.constant 0 : index
    %c0_8 = arith.constant 0 : index
    %c0_9 = arith.constant 0 : index
    %c0_10 = arith.constant 0 : index
    %12 = vector.load %arg4[%c0_7, %c0_8, %c0_9, %c0_10] : memref<1x16x16x128xf32, #tpu.memory_space<vmem>>, vector<1x16x16x128xf32>
    %13 = vector.shape_cast %12 : vector<1x16x16x128xf32> to vector<256x128xf32>
    %14 = vector.broadcast %5 : f32 to vector<256x128xf32>
    %15 = arith.mulf %13, %14 : vector<256x128xf32>
    %16 = tpu.concatenate %9, %11, %15 in 1 : vector<256x128xf32>, vector<256x128xf32>, vector<256x128xf32> -> vector<256x384xf32>
    %c0_11 = arith.constant 0 : index
    %c0_12 = arith.constant 0 : index
    %17 = vector.load %arg5[%c0_11, %c0_12] : memref<384x128xf32, #tpu.memory_space<vmem>>, vector<384x128xf32>
    %cst = arith.constant dense<0.000000e+00> : vector<256x128xf32>
    %18 = tpu.matmul %16, %17, %cst {dimension_numbers = #tpu.dot_dimension_numbers<[1], [0], [0], [1], [0, 0, 1, 1], [], []>} : vector<256x384xf32>, vector<384x128xf32>, vector<256x128xf32> -> vector<256x128xf32>
    %c0_13 = arith.constant 0 : index
    %c0_14 = arith.constant 0 : index
    %19 = vector.load %arg6[%c0_13, %c0_14] : memref<1x128xf32, #tpu.memory_space<vmem>>, vector<1x128xf32>
    %20 = vector.broadcast %19 : vector<1x128xf32> to vector<256x128xf32>
    %21 = arith.addf %18, %20 : vector<256x128xf32>
    %cst_15 = arith.constant 0.000000e+00 : f32
    %22 = vector.broadcast %cst_15 : f32 to vector<256x128xf32>
    %23 = arith.maximumf %21, %22 : vector<256x128xf32>
    %24 = vector.shape_cast %23 : vector<256x128xf32> to vector<16x16x128xf32>
    %cst_16 = arith.constant 0.000000e+00 : f32
    %25 = vector.broadcast %cst_16 : f32 to vector<16x16x128xf32>
    %26 = tpu.concatenate %25, %24, %25 in 1 : vector<16x16x128xf32>, vector<16x16x128xf32>, vector<16x16x128xf32> -> vector<16x48x128xf32>
    %27 = vector.extract_strided_slice %26 {offsets = [0, 0, 0], sizes = [16, 16, 128], strides = [1, 1, 1]} : vector<16x48x128xf32> to vector<16x16x128xf32>
    %28 = vector.shape_cast %27 : vector<16x16x128xf32> to vector<256x128xf32>
    %29 = vector.extract_strided_slice %26 {offsets = [0, 16, 0], sizes = [16, 16, 128], strides = [1, 1, 1]} : vector<16x48x128xf32> to vector<16x16x128xf32>
    %30 = vector.shape_cast %29 : vector<16x16x128xf32> to vector<256x128xf32>
    %31 = vector.extract_strided_slice %26 {offsets = [0, 32, 0], sizes = [16, 16, 128], strides = [1, 1, 1]} : vector<16x48x128xf32> to vector<16x16x128xf32>
    %32 = vector.shape_cast %31 : vector<16x16x128xf32> to vector<256x128xf32>
    %33 = tpu.concatenate %28, %30, %32 in 1 : vector<256x128xf32>, vector<256x128xf32>, vector<256x128xf32> -> vector<256x384xf32>
    %c0_17 = arith.constant 0 : index
    %c0_18 = arith.constant 0 : index
    %34 = vector.load %arg7[%c0_17, %c0_18] : memref<384x128xf32, #tpu.memory_space<vmem>>, vector<384x128xf32>
    %cst_19 = arith.constant dense<0.000000e+00> : vector<256x128xf32>
    %35 = tpu.matmul %33, %34, %cst_19 {dimension_numbers = #tpu.dot_dimension_numbers<[1], [0], [0], [1], [0, 0, 1, 1], [], []>} : vector<256x384xf32>, vector<384x128xf32>, vector<256x128xf32> -> vector<256x128xf32>
    %c0_20 = arith.constant 0 : index
    %c0_21 = arith.constant 0 : index
    %36 = vector.load %arg8[%c0_20, %c0_21] : memref<1x128xf32, #tpu.memory_space<vmem>>, vector<1x128xf32>
    %37 = vector.broadcast %36 : vector<1x128xf32> to vector<256x128xf32>
    %38 = arith.addf %35, %37 : vector<256x128xf32>
    %39 = vector.shape_cast %38 : vector<256x128xf32> to vector<1x16x16x128xf32>
    %c0_22 = arith.constant 0 : index
    %c0_23 = arith.constant 0 : index
    %c0_24 = arith.constant 0 : index
    %c0_25 = arith.constant 0 : index
    %40 = vector.load %arg9[%c0_22, %c0_23, %c0_24, %c0_25] : memref<1x16x16x128xf32, #tpu.memory_space<vmem>>, vector<1x16x16x128xf32>
    tpu.vector_store %arg9[%c0_22, %c0_23, %c0_24, %c0_25], %39 {strides = array<i32>} : memref<1x16x16x128xf32, #tpu.memory_space<vmem>>, vector<1x16x16x128xf32>,
    %cst_26 = arith.constant dense<0.000000e+00> : vector<128xf32>
    %41 = vector.multi_reduction <add>, %38, %cst_26 [0] : vector<256x128xf32> to vector<128xf32>
    %42 = vector.shape_cast %41 : vector<128xf32> to vector<1x128xf32>
    %43 = arith.mulf %38, %38 : vector<256x128xf32>
    %cst_27 = arith.constant dense<0.000000e+00> : vector<128xf32>
    %44 = vector.multi_reduction <add>, %43, %cst_27 [0] : vector<256x128xf32> to vector<128xf32>
    %45 = vector.shape_cast %44 : vector<128xf32> to vector<1x128xf32>
    %46 = tpu.concatenate %42, %45 in 0 : vector<1x128xf32>, vector<1x128xf32> -> vector<2x128xf32>
    %47 = vector.shape_cast %46 : vector<2x128xf32> to vector<1x2x128xf32>
    %c0_28 = arith.constant 0 : index
    %c0_29 = arith.constant 0 : index
    %c0_30 = arith.constant 0 : index
    %48 = vector.load %arg10[%c0_28, %c0_29, %c0_30] : memref<1x2x128xf32, #tpu.memory_space<vmem>>, vector<1x2x128xf32>
    tpu.vector_store %arg10[%c0_28, %c0_29, %c0_30], %47 {strides = array<i32>} : memref<1x2x128xf32, #tpu.memory_space<vmem>>, vector<1x2x128xf32>,
    return
  }
  func.func @transform_0(%arg0: i32, %arg1: i32) -> (i32, i32, i32, i32) {
    %c1_i32 = arith.constant 1 : i32
    %0 = arith.subi %arg1, %c1_i32 : i32
    %c0_i32 = arith.constant 0 : i32
    %1 = arith.maxsi %0, %c0_i32 : i32
    %c0_i32_0 = arith.constant 0 : i32
    %c0_i32_1 = arith.constant 0 : i32
    %c0_i32_2 = arith.constant 0 : i32
    return %arg0, %1, %c0_i32_0, %c0_i32_1 : i32, i32, i32, i32
  }
  func.func @transform_1(%arg0: i32, %arg1: i32) -> (i32, i32, i32, i32) {
    %c0_i32 = arith.constant 0 : i32
    %c0_i32_0 = arith.constant 0 : i32
    %c0_i32_1 = arith.constant 0 : i32
    return %arg0, %arg1, %c0_i32, %c0_i32_0 : i32, i32, i32, i32
  }
  func.func @transform_2(%arg0: i32, %arg1: i32) -> (i32, i32, i32, i32) {
    %c1_i32 = arith.constant 1 : i32
    %0 = arith.addi %arg1, %c1_i32 : i32
    %c0_i32 = arith.constant 0 : i32
    %1 = arith.minsi %0, %c0_i32 : i32
    %c0_i32_0 = arith.constant 0 : i32
    %c0_i32_1 = arith.constant 0 : i32
    %c0_i32_2 = arith.constant 0 : i32
    return %arg0, %1, %c0_i32_0, %c0_i32_1 : i32, i32, i32, i32
  }
  func.func @transform_3(%arg0: i32, %arg1: i32) -> (i32, i32) {
    %c0_i32 = arith.constant 0 : i32
    %c0_i32_0 = arith.constant 0 : i32
    %c0_i32_1 = arith.constant 0 : i32
    return %c0_i32, %c0_i32_0 : i32, i32
  }
  func.func @transform_4(%arg0: i32, %arg1: i32) -> (i32, i32) {
    %c0_i32 = arith.constant 0 : i32
    %c0_i32_0 = arith.constant 0 : i32
    %c0_i32_1 = arith.constant 0 : i32
    return %c0_i32, %c0_i32_0 : i32, i32
  }
  func.func @transform_5(%arg0: i32, %arg1: i32) -> (i32, i32) {
    %c0_i32 = arith.constant 0 : i32
    %c0_i32_0 = arith.constant 0 : i32
    %c0_i32_1 = arith.constant 0 : i32
    return %c0_i32, %c0_i32_0 : i32, i32
  }
  func.func @transform_6(%arg0: i32, %arg1: i32) -> (i32, i32) {
    %c0_i32 = arith.constant 0 : i32
    %c0_i32_0 = arith.constant 0 : i32
    %c0_i32_1 = arith.constant 0 : i32
    return %c0_i32, %c0_i32_0 : i32, i32
  }
  func.func @transform_7(%arg0: i32, %arg1: i32) -> (i32, i32, i32, i32) {
    %c0_i32 = arith.constant 0 : i32
    %c0_i32_0 = arith.constant 0 : i32
    %c0_i32_1 = arith.constant 0 : i32
    return %arg0, %arg1, %c0_i32, %c0_i32_0 : i32, i32, i32, i32
  }
  func.func @transform_8(%arg0: i32, %arg1: i32) -> (i32, i32, i32) {
    %c1_i32 = arith.constant 1 : i32
    %0 = arith.muli %arg0, %c1_i32 : i32
    %1 = arith.addi %0, %arg1 : i32
    %c0_i32 = arith.constant 0 : i32
    %c0_i32_0 = arith.constant 0 : i32
    %c0_i32_1 = arith.constant 0 : i32
    return %1, %c0_i32, %c0_i32_0 : i32, i32, i32
  }
}

</mosaic_0001>

<bundles_post_ra>
// kernel: tpu_custom_call.1
= control target key start
LH: loop header
LB: loop body
LE: loop exit
PB: predicated region body
PF: predicated region fallthrough
CT: control target
= control target key end

     0   :  { %s3021_s0 = inlined_call_operand.hbm [shape: f32[2,16,16,128], index: 0, kind: input, shape index: {}]   ;;  %s3022_s1 = inlined_call_operand.hbm [shape: f32[2,16,16,128], index: 1, kind: input, shape index: {}]   ;;  %s3023_s2 = inlined_call_operand.hbm [shape: f32[2,16,16,128], index: 2, kind: input, shape index: {}]   ;;  %s3024_s3 = inlined_call_operand.hbm [shape: f32[384,128], index: 3, kind: input, shape index: {}]   ;;  %s3025_s4 = inlined_call_operand.vmem [shape: f32[1,128], index: 4, kind: input, shape index: {}]   ;;  %s3026_s5 = inlined_call_operand.hbm [shape: f32[384,128], index: 5, kind: input, shape index: {}]   ;;  %s3027_s6 = inlined_call_operand.vmem [shape: f32[1,128], index: 6, kind: input, shape index: {}]   ;;  %s3028_s7 = inlined_call_operand.hbm [shape: f32[2,16,16,128], index: 7, kind: output, shape index: {0}]   ;;  %s3029_s8 = inlined_call_operand.hbm [shape: f32[2,2,128], index: 8, kind: output, shape index: {1}]  }
   0x1   :  { %3042 = sst [smem:[#allocation26_spill]] %s3022_s1 }
   0x2   :  { %3043 = sst [smem:[#allocation27_spill]] %s3024_s3 }
   0x3   :  { %3044 = sst [smem:[#allocation28_spill]] %s3026_s5 }
   0x4   :  { %3045 = sst [smem:[#allocation29_spill]] %s3029_s8 }
   0x5   :  { %14 = vsyncpa [#allocation3], 0 }
   0x6   :  { %16 = vsyncpa [#allocation3 + $0x1], 0 }
   0x7   :  { %17 = vsyncpa [#allocation6], 0 }
   0x8   :  { %19 = vsyncpa [#allocation6 + $0x1], 0 }
   0x9   :  { %20 = vsyncpa [#allocation9], 0 }
   0xa   :  { %21 = vsyncpa [#allocation4], 0 }
   0xb   :  { %23 = vsyncpa [#allocation4 + $0x1], 0 }
   0xc   :  { %24 = vsyncpa [#allocation13], 0 }
   0xd   :  { %26 = vsyncpa [#allocation13 + $0x1], 0  ;;  %s2359_s27 = smov 0   ;;  %s2361_s28 = smov 0  }
   0xe   :  { %s2363_s29 = smov 0   ;;  %s2365_s30 = smov 0  }
   0xf   :  { %s2367_s9 = smov 0   ;;  %s2369_s10 = smov 0  }
  0x10 LB: > { %3046 = sst [smem:[#allocation19_spill]] %s2285_s27  ;;  %s2390_s11 = sadd.s32 4294967295, %s2305_s10   ;;  %s2305_s10 = sphi %s2369_s10, %s32_s10   ;;  %s2301_s9 = sphi %s2367_s9, %s3071_s9   ;;  %s2297_s30 = sphi %s2365_s30, %s3070_s30   ;;  %s2293_s29 = sphi %s2363_s29, %s3069_s29   ;;  %s2289_s28 = sphi %s2361_s28, %s3073_s28   ;;  %s2285_s27 = sphi %s2359_s27, %s3072_s27  }
  0x11   : > { %3047 = sst [smem:[#allocation20_spill]] %s2293_s29  ;;  %s1863_s12 = sadd.s32 4294967294, %s2305_s10  }
  0x12   : > { %3048 = sst [smem:[#allocation21_spill]] %s2301_s9  ;;  %p72_p0 = scmp.ne.s32.totalorder %s2289_s28, %s2285_s27 }
  0x13   : > { %3049 = sst [smem:[#allocation22_spill]] %s2305_s10  ;;  %p73_p1 = scmp.eq.s32.totalorder %s2390_s11, 0 }
  0x14   : > { %p244_p2 = scmp.eq.s32.totalorder %s2390_s11, 1  ;;  %p250_p3 = scmp.eq.s32.totalorder %s1863_s12, 1 }
  0x15   : > { %p2399_p4 = por %p73_p1, %p72_p0  ;;  %p1864_p5 = scmp.ge.s32.totalorder %s2305_s10, 1 }
  0x16   : > { %p2404_p6 = por %p250_p3, %p72_p0  ;;  %p285_p7 = scmp.lt.s32.totalorder %s2305_s10, 3 }
  0x17   : > { %s3053_s3 = sld [smem:[#allocation27_spill]]  ;;  %s2307_s19 = smov [#allocation8]  }
  0x18   : > { %s3051_s14 = scalar_select %p2404_p6, 1, 0 }
  0x19   : > { %p2412_p8 = pnand %p1864_p5, %p285_p7  ;;  %s298_s20 = sshll.u32 %s2307_s19, 4  ;;  %s299_s20 = int_to_ptr.vmem [resolvable:$true] %s298_s20 }
  0x1a   : > { %3052 = sst [smem:[#allocation23_spill]] %s3051_s14  ;;  %p1867_p11 = scmp.ge.s32.totalorder %s2305_s10, 2 }
  0x1b   : > { %p1946_p9 = pneg %p2412_p8  ;;  %s3030_s22 = smov 128  }
  0x1c   : > { %s3032_s23 = smov 8   ;;  %s44_s24 = sadd.s32 1, %s2301_s9 }
  0x1d   : > { %s296_s17 = sshll.u32 %s3053_s3, 4  ;;  %p2420_p10 = pnand %p1946_p9, %p73_p1  ;;  %s297_s17 = int_to_ptr.hbm [resolvable:$true] %s296_s17 }
  0x1e   : > { %p46_p12 = scmp.ge.s32.totalorder %s44_s24, 2  ;;  %s59_s25 = sadd.s32 1, %s2293_s29 }
  0x1f   : > { %1949 = dma.hbm_to_vmem [thread:$0]  (!%p2420_p10), %s297_s17, 6144, %s299_s20, [#allocation9], %s3030_s22, %s3030_s22, %s3032_s23  }
  0x20   : > { %p66_p13 = scmp.ne.s32.totalorder %s2293_s29, %s2289_s28  ;;  %p67_p0 = scmp.eq.s32.totalorder %s2305_s10, 0 }
  0x21   : > { %s3075_s24 = smov (%p46_p12, %s44_s24), 0  ;;  %p1972_p7 = scmp.lt.s32.totalorder %s2305_s10, 2 }
  0x22   : > { %3056 = sst [smem:[#allocation24_spill]] %s3075_s24  ;;  %p68_p3 = por %p67_p0, %p66_p13 }
  0x23   : > { %p2439_p5 = por %p244_p2, %p66_p13  ;;  %s54_s12 = ssub.s32 %s2301_s9, %s3075_s24 }
  0x24   : > { %p57_p9 = scmp.eq.s32.totalorder %s54_s12, 0  ;;  %s332_s15 = sand.u32 1, %s2293_s29  }
  0x25   : > { %s2447_s16 = sshll.u32 %s332_s15, 8  ;;  %s2450_s17 = sshll.u32 %s2301_s9, 8 }
  0x26   : > { %s2453_s19 = scalar_select %p57_p9, %s2293_s29, %s59_s25  }
  0x27   : > { %p2455_p12 = pnand %p1972_p7, %p68_p3  ;;  %s360_s22 = sand.u32 1, %s2305_s10  }
  0x28   : > { %3058 = sst [smem:[#allocation25_spill]] %s2453_s19  ;;  %s364_s14 = scalar_lea.vmem [#allocation5], %s2447_s16 }
  0x29   : > { %s3060_s1 = sld [smem:[#allocation26_spill]]  ;;  %s375_s9 = sshll.u32 %s364_s14, 4  ;;  %s376_s9 = int_to_ptr.vmem [resolvable:$true] %s375_s9 }
  0x2a   : > { %s361_s25 = scalar_lea.sflag [#allocation6], %s360_s22  ;;  %s3061_s19 = smov 8  }
  0x2b   : > { %s3062_s29 = smov 128   ;;  %s3063_s5 = sld [smem:[#allocation28_spill]] }
  0x2c   : > { %s2310_s3 = smov [#allocation10]   ;;  %s333_s27 = scalar_lea.sflag [#allocation3], %s332_s15 }
  0x2d   : > { %s315_s23 = sshll.u32 %s2310_s3, 4  ;;  %s400_s3 = scalar_lea.hbm %s3023_s2, %s2450_s17  ;;  %s316_s23 = int_to_ptr.vmem [resolvable:$true] %s315_s23 }
  0x2f   : > { %s372_s12 = scalar_lea.hbm %s3060_s1, %s2450_s17 }
  0x30   : > { %s373_s24 = sshll.u32 %s372_s12, 4  ;;  %s347_s12 = scalar_lea.hbm %s3021_s0, %s2450_s17  ;;  %s374_s24 = int_to_ptr.hbm [resolvable:$true] %s373_s24 }
  0x31   : > { %1959 = dma.hbm_to_vmem [thread:$0]  (!%p2455_p12), %s374_s24, 4096, %s376_s9, %s361_s25, %s3062_s29, %s3062_s29, %s3061_s19  }
  0x32   : > { %s313_s8 = sshll.u32 %s3063_s5, 4  ;;  %s348_s9 = sshll.u32 %s347_s12, 4  ;;  %s314_s8 = int_to_ptr.hbm [resolvable:$true] %s313_s8  ;;  %s349_s9 = int_to_ptr.hbm [resolvable:$true] %s348_s9 }
  0x33   : > { %1952 = dma.hbm_to_vmem [thread:$0]  (!%p2420_p10), %s314_s8, 6144, %s316_s23, [#allocation9], %s3062_s29, %s3062_s29, %s3061_s19  }
  0x34   : > { %s336_s24 = scalar_lea.vmem [#allocation2], %s2447_s16  ;;  %s401_s8 = sshll.u32 %s400_s3, 4  ;;  %s402_s8 = int_to_ptr.hbm [resolvable:$true] %s401_s8 }
  0x35   : > { %s350_s1 = sshll.u32 %s336_s24, 4  ;;  %s389_s23 = scalar_lea.vmem [#allocation7], %s2447_s16  ;;  %s351_s1 = int_to_ptr.vmem [resolvable:$true] %s350_s1 }
  0x36   : > { %1956 = dma.hbm_to_vmem [thread:$0]  (!%p2455_p12), %s349_s9, 4096, %s351_s1, %s333_s27, %s3062_s29, %s3062_s29, %s3061_s19  }
  0x37   : > { %s403_s5 = sshll.u32 %s389_s23, 4  ;;  %415 = sbr.rel (%p2412_p8) target bundleno = 765 (0x2fd), region = 48  ;;  %s404_s5 = int_to_ptr.vmem [resolvable:$true] %s403_s5 }
  0x38   : > { %1962 = dma.hbm_to_vmem [thread:$0]  (!%p2455_p12), %s402_s8, 4096, %s404_s5, %s361_s25, %s3062_s29, %s3062_s29, %s3061_s19  }
  0x39   : > { %s2501_s1 = sand.u32 (!%p2412_p8), 1, %s2289_s28  }
  0x3a   : > { %s2504_s15 = sshll.u32 (!%p2412_p8), %s2501_s1, 8  ;;  %s418_s16 = scalar_lea.sflag (!%p2412_p8), [#allocation3], %s2501_s1 }
  0x3b   : > { %s2508_s17 = scalar_lea.vmem (!%p2412_p8), [#allocation2], %s2504_s15 }
  0x3c   : > { %2264 = dma.done.wait (%p2399_p4), %s418_s16, 4096  }
  0x3d   : > { %2266 = vsyncadd (%p2399_p4), %s418_s16, 4294963200  ;;  %s427_s5 = sand.u32 1, %s2390_s11   ;;  %s2516_s18 = scalar_lea.vmem [#allocation5], %s2504_s15 }
  0x3e   : > { %s428_s29 = scalar_lea.sflag [#allocation6], %s427_s5 }
  0x3f   : > { %2268 = dma.done.wait (%p2399_p4), %s428_s29, 8192  }
  0x40   : > { %2270 = vsyncadd (%p2399_p4), %s428_s29, 4294959104  ;;  %s2523_s19 = scalar_lea.vmem [#allocation7], %s2504_s15 }
  0x41   : > { %2272 = dma.done.wait (%p73_p1), [#allocation9], 12288  }
  0x42   : > { %2274 = vsyncadd (%p73_p1), [#allocation9], 4294955008  ;;  %v694_v0 = vld [vmem:[#allocation8 + $0x78] sm:$0xff]  ;;  %v693_v1 = vld [vmem:[#allocation8 + $0x70] sm:$0xff]  ;;  %s2772_s14 = scalar_lea.vmem [#allocation11], %s2504_s15  ;;  %s1895_s22 = sshll.u32 %s2297_s30, 8 }
  0x43   : > { %v710_v2 = vld [vmem:[#allocation8 + $0xf8] sm:$0xff]  ;;  %1896 = vmatpush.msra.mxu2 %v694_v0  ;;  %v709_v3 = vld [vmem:[#allocation8 + $0xf0] sm:$0xff]  ;;  %v692_v4 = vld [vmem:[#allocation8 + $0x68] sm:$0xff]  ;;  %731 = vmatpush.msra.mxu0 %v694_v0  ;;  %s1654_s24 = scalar_lea.hbm %s3028_s7, %s1895_s22  ;;  %s1655_s27 = sshll.u32 %s2772_s14, 4  ;;  %s1656_s27 = int_to_ptr.vmem [resolvable:$true] %s1655_s27 }
  0x44   : > { %1912 = vmatpush.msra.mxu3 %v710_v2  ;;  %v708_v5 = vld [vmem:[#allocation8 + $0xe8] sm:$0xff]  ;;  %844 = vmatpush.msra.mxu1 %v710_v2  ;;  %v691_v6 = vld [vmem:[#allocation8 + $0x60] sm:$0xff]  ;;  %v690_v8 = vld [vmem:[#allocation8 + $0x58] sm:$0xff]  ;;  %s1657_s10 = sshll.u32 %s1654_s24, 4  ;;  %s1635_s21 = scalar_lea.sflag [#allocation4], %s2501_s1  ;;  %s1658_s10 = int_to_ptr.hbm [resolvable:$true] %s1657_s10 }
  0x45   : > { %1897 = vmatpush.msra.mxu2 %v693_v1  ;;  %v707_v7 = vld [vmem:[#allocation8 + $0xe0] sm:$0xff]  ;;  %732 = vmatpush.msra.mxu0 %v693_v1  ;;  %v706_v9 = vld [vmem:[#allocation8 + $0xd8] sm:$0xff]  ;;  %v689_v10 = vld [vmem:[#allocation8 + $0x50] sm:$0xff]  ;;  %s2197_s3 = sshra.s32 %s1658_s10, 4  ;;  %s2203_s16 = scalar_lea.hbm %s3028_s7, 512  ;;  %s2198_s3 = int_to_ptr.hbm [resolvable:$true] %s2197_s3 }
  0x46   : > { %1913 = vmatpush.msra.mxu3 %v709_v3  ;;  %845 = vmatpush.msra.mxu1 %v709_v3  ;;  %v705_v11 = vld [vmem:[#allocation8 + $0xd0] sm:$0xff]  ;;  %v688_v12 = vld [vmem:[#allocation8 + $0x48] sm:$0xff]  ;;  %v687_v14 = vld [vmem:[#allocation8 + $0x40] sm:$0xff]  ;;  %s2199_s8 = scalar_lea.hbm %s2198_s3, 256  ;;  %p2204_p8 = scmp.lt.s32.totalorder %s2198_s3, %s3028_s7 }
  0x47   : > { %1898 = vmatpush.msra.mxu2 %v692_v4  ;;  %733 = vmatpush.msra.mxu0 %v692_v4  ;;  %v704_v13 = vld [vmem:[#allocation8 + $0xc8] sm:$0xff]  ;;  %v703_v15 = vld [vmem:[#allocation8 + $0xc0] sm:$0xff]  ;;  %v686_v16 = vld [vmem:[#allocation8 + $0x38] sm:$0xff]  ;;  %p2200_p1 = scmp.ne.s32.totalorder %s2198_s3, %s2199_s8  ;;  %p2205_p10 = scmp.lt.s32.totalorder %s2203_s16, %s2199_s8 }
  0x48   : > { %1914 = vmatpush.msra.mxu3 %v708_v5  ;;  %846 = vmatpush.msra.mxu1 %v708_v5  ;;  %v702_v17 = vld [vmem:[#allocation8 + $0xb8] sm:$0xff]  ;;  %v685_v18 = vld [vmem:[#allocation8 + $0x30] sm:$0xff]  ;;  %v684_v20 = vld [vmem:[#allocation8 + $0x28] sm:$0xff] }
  0x49   : > { %1899 = vmatpush.msra.mxu2 %v691_v6  ;;  %734 = vmatpush.msra.mxu0 %v691_v6  ;;  %v701_v19 = vld [vmem:[#allocation8 + $0xb0] sm:$0xff]  ;;  %v700_v21 = vld [vmem:[#allocation8 + $0xa8] sm:$0xff]  ;;  %v683_v22 = vld [vmem:[#allocation8 + $0x20] sm:$0xff]  ;;  %p2201_p2 = pnand %p2200_p1, %p2439_p5  ;;  %p2206_p13 = por %p2205_p10, %p2204_p8 }
  0x4a   : > { %1915 = vmatpush.msra.mxu3 %v707_v7  ;;  %847 = vmatpush.msra.mxu1 %v707_v7  ;;  %v699_v23 = vld [vmem:[#allocation8 + $0xa0] sm:$0xff]  ;;  %v682_v24 = vld [vmem:[#allocation8 + $0x18] sm:$0xff]  ;;  %v681_v26 = vld [vmem:[#allocation8 + $0x10] sm:$0xff] }
  0x4b   : > { %1900 = vmatpush.msra.mxu2 %v690_v8  ;;  %735 = vmatpush.msra.mxu0 %v690_v8  ;;  %v698_v25 = vld [vmem:[#allocation8 + $0x98] sm:$0xff]  ;;  %v697_v27 = vld [vmem:[#allocation8 + $0x90] sm:$0xff]  ;;  %v533_v28 = vld [vmem:[%s2508_s17 + $0x80] sm:$0xff]  ;;  %p2202_p4 = pneg %p2201_p2 }
  0x4c   : > { %1916 = vmatpush.msra.mxu3 %v706_v9  ;;  %848 = vmatpush.msra.mxu1 %v706_v9  ;;  %v680_v29 = vld [vmem:[#allocation8 + $0x8] sm:$0xff]  ;;  %v679_v31 = vld [vmem:[#allocation8] sm:$0xff]  ;;  %v566_v32 = vmul.f32 0.0, %v533_v28  ;;  %v726_v35 = vld [vmem:[#allocation8 + $0x178] sm:$0xff] }
  0x4d   : > { %1901 = vmatpush.msra.mxu2 %v689_v10  ;;  %736 = vmatpush.msra.mxu0 %v689_v10  ;;  %v696_v30 = vld [vmem:[#allocation8 + $0x88] sm:$0xff]  ;;  %v695_v33 = vld [vmem:[#allocation8 + $0x80] sm:$0xff]  ;;  %v725_v36 = vld [vmem:[#allocation8 + $0x170] sm:$0xff]  ;;  %p2207_p0 = pnand %p2206_p13, %p2202_p4 }
  0x4e   : > { %1917 = vmatpush.msra.mxu3 %v705_v11  ;;  %849 = vmatpush.msra.mxu1 %v705_v11  ;;  %v598_v34 = vld [vmem:[%s2516_s18 + $0x80] sm:$0xff]  ;;  %v534_v37 = vld [vmem:[%s2508_s17 + $0x88] sm:$0xff]  ;;  %v722_v42 = vld [vmem:[#allocation8 + $0x158] sm:$0xff] }
  0x4f   : > { %1902 = vmatpush.msra.mxu2 %v688_v12  ;;  %737 = vmatpush.msra.mxu0 %v688_v12  ;;  %v724_v38 = vld [vmem:[#allocation8 + $0x168] sm:$0xff]  ;;  %v567_v39 = vmul.f32 0.0, %v534_v37  ;;  %v723_v40 = vld [vmem:[#allocation8 + $0x160] sm:$0xff]  ;;  %v721_v43 = vld [vmem:[#allocation8 + $0x150] sm:$0xff] }
  0x50   : > { %1918 = vmatpush.msra.mxu3 %v704_v13  ;;  %850 = vmatpush.msra.mxu1 %v704_v13  ;;  %v599_v41 = vld [vmem:[%s2516_s18 + $0x88] sm:$0xff]  ;;  %v535_v44 = vld [vmem:[%s2508_s17 + $0x90] sm:$0xff]  ;;  %v536_v48 = vld [vmem:[%s2508_s17 + $0x98] sm:$0xff] }
  0x51   : > { %1903 = vmatpush.msra.mxu2 %v687_v14  ;;  %738 = vmatpush.msra.mxu0 %v687_v14  ;;  %v568_v45 = vmul.f32 0.0, %v535_v44  ;;  %v600_v46 = vld [vmem:[%s2516_s18 + $0x90] sm:$0xff]  ;;  %v720_v47 = vld [vmem:[#allocation8 + $0x148] sm:$0xff]  ;;  %v569_v49 = vmul.f32 0.0, %v536_v48  ;;  %v601_v50 = vld [vmem:[%s2516_s18 + $0x98] sm:$0xff] }
  0x52   : > { %1919 = vmatpush.msra.mxu3 %v703_v15  ;;  %851 = vmatpush.msra.mxu1 %v703_v15  ;;  %v719_v51 = vld [vmem:[#allocation8 + $0x140] sm:$0xff]  ;;  %v718_v55 = vld [vmem:[#allocation8 + $0x138] sm:$0xff]  ;;  %v538_v56 = vld [vmem:[%s2508_s17 + $0xa8] sm:$0xff] }
  0x53   : > { %1904 = vmatpush.msra.mxu2 %v686_v16  ;;  %739 = vmatpush.msra.mxu0 %v686_v16  ;;  %v537_v52 = vld [vmem:[%s2508_s17 + $0xa0] sm:$0xff]  ;;  %v571_v57 = vmul.f32 0.0, %v538_v56  ;;  %v603_v58 = vld [vmem:[%s2516_s18 + $0xa8] sm:$0xff]  ;;  %v717_v59 = vld [vmem:[#allocation8 + $0x130] sm:$0xff] }
  0x54   : > { %1920 = vmatpush.msra.mxu3 %v702_v17  ;;  %852 = vmatpush.msra.mxu1 %v702_v17  ;;  %v570_v53 = vmul.f32 0.0, %v537_v52  ;;  %v602_v54 = vld [vmem:[%s2516_s18 + $0xa0] sm:$0xff]  ;;  %v539_v60 = vld [vmem:[%s2508_s17 + $0xb0] sm:$0xff]  ;;  %v716_v63 = vld [vmem:[#allocation8 + $0x128] sm:$0xff] }
  0x55   : > { %1905 = vmatpush.msra.mxu2 %v685_v18  ;;  %740 = vmatpush.msra.mxu0 %v685_v18  ;;  %v572_v61 = vmul.f32 0.0, %v539_v60  ;;  %v604_v62 = vld [vmem:[%s2516_s18 + $0xb0] sm:$0xff]  ;;  %v540_v0 = vld [vmem:[%s2508_s17 + $0xb8] sm:$0xff]  ;;  %v715_v3 = vld [vmem:[#allocation8 + $0x120] sm:$0xff] }
  0x56   : > { %1921 = vmatpush.msra.mxu3 %v701_v19  ;;  %853 = vmatpush.msra.mxu1 %v701_v19  ;;  %v573_v1 = vmul.f32 0.0, %v540_v0  ;;  %v605_v2 = vld [vmem:[%s2516_s18 + $0xb8] sm:$0xff]  ;;  %v541_v4 = vld [vmem:[%s2508_s17 + $0xc0] sm:$0xff]  ;;  %v542_v8 = vld [vmem:[%s2508_s17 + $0xc8] sm:$0xff] }
  0x57   : > { %1906 = vmatpush.msra.mxu2 %v684_v20  ;;  %741 = vmatpush.msra.mxu0 %v684_v20  ;;  %v574_v5 = vmul.f32 0.0, %v541_v4  ;;  %v606_v6 = vld [vmem:[%s2516_s18 + $0xc0] sm:$0xff]  ;;  %v714_v7 = vld [vmem:[#allocation8 + $0x118] sm:$0xff]  ;;  %v575_v9 = vmul.f32 0.0, %v542_v8  ;;  %v607_v10 = vld [vmem:[%s2516_s18 + $0xc8] sm:$0xff] }
  0x58   : > { %1922 = vmatpush.msra.mxu3 %v700_v21  ;;  %854 = vmatpush.msra.mxu1 %v700_v21  ;;  %v713_v11 = vld [vmem:[#allocation8 + $0x110] sm:$0xff]  ;;  %v712_v15 = vld [vmem:[#allocation8 + $0x108] sm:$0xff]  ;;  %v544_v16 = vld [vmem:[%s2508_s17 + $0xd8] sm:$0xff] }
  0x59   : > { %1907 = vmatpush.msra.mxu2 %v683_v22  ;;  %742 = vmatpush.msra.mxu0 %v683_v22  ;;  %v543_v12 = vld [vmem:[%s2508_s17 + $0xd0] sm:$0xff]  ;;  %v577_v17 = vmul.f32 0.0, %v544_v16  ;;  %v609_v18 = vld [vmem:[%s2516_s18 + $0xd8] sm:$0xff]  ;;  %v711_v19 = vld [vmem:[#allocation8 + $0x100] sm:$0xff] }
  0x5a   : > { %1923 = vmatpush.msra.mxu3 %v699_v23  ;;  %855 = vmatpush.msra.mxu1 %v699_v23  ;;  %v576_v13 = vmul.f32 0.0, %v543_v12  ;;  %v608_v14 = vld [vmem:[%s2516_s18 + $0xd0] sm:$0xff]  ;;  %v545_v20 = vld [vmem:[%s2508_s17 + $0xe0] sm:$0xff]  ;;  %v548_v44 = vld [vmem:[%s2508_s17 + $0xf8] sm:$0xff] }
  0x5b   : > { %1908 = vmatpush.msra.mxu2 %v682_v24  ;;  %743 = vmatpush.msra.mxu0 %v682_v24  ;;  %v578_v21 = vmul.f32 0.0, %v545_v20  ;;  %v610_v22 = vld [vmem:[%s2516_s18 + $0xe0] sm:$0xff]  ;;  %v1117_v24 = vld [vmem:[#allocation10 + $0x78] sm:$0xff]  ;;  %v1147_v52 = vld [vmem:[#allocation10 + $0x168] sm:$0xff] }
  0x5c   : > { %1924 = vmatpush.msra.mxu3 %v698_v25  ;;  %856 = vmatpush.msra.mxu1 %v698_v25  ;;  %v517_v23 = vld [vmem:[%s2508_s17] sm:$0xff]  ;;  %v520_v48 = vld [vmem:[%s2508_s17 + $0x18] sm:$0xff]  ;;  %v587_v8 = vld [vmem:[%s2516_s18 + $0x28] sm:$0xff] }
  0x5d   : > { %1909 = vmatpush.msra.mxu2 %v681_v26  ;;  %744 = vmatpush.msra.mxu0 %v681_v26  ;;  %v550_v25 = vmul.f32 0.0, %v517_v23  ;;  %v546_v26 = vld [vmem:[%s2508_s17 + $0xe8] sm:$0xff]  ;;  %v521_v56 = vld [vmem:[%s2508_s17 + $0x20] sm:$0xff]  ;;  %v1128_v12 = vld [vmem:[#allocation10 + $0xd0] sm:$0xff] }
  0x5e   : > { %1925 = vmatpush.msra.mxu3 %v697_v27  ;;  %857 = vmatpush.msra.mxu1 %v697_v27  ;;  %v582_v27 = vld [vmem:[%s2516_s18] sm:$0xff]  ;;  %v579_v28 = vmul.f32 0.0, %v546_v26  ;;  %v1143_v23 = vld [vmem:[#allocation10 + $0x148] sm:$0xff]  ;;  %v589_v26 = vld [vmem:[%s2516_s18 + $0x38] sm:$0xff] }
  0x5f   : > { %1910 = vmatpush.msra.mxu2 %v680_v29  ;;  %745 = vmatpush.msra.mxu0 %v680_v29  ;;  %v611_v29 = vld [vmem:[%s2516_s18 + $0xe8] sm:$0xff]  ;;  %v1146_v60 = vld [vmem:[#allocation10 + $0x160] sm:$0xff] }
  0x60   : > { %1926 = vmatpush.msra.mxu3 %v696_v30  ;;  %858 = vmatpush.msra.mxu1 %v696_v30  ;;  %v518_v30 = vld [vmem:[%s2508_s17 + $0x8] sm:$0xff]  ;;  %v1110_v20 = vld [vmem:[#allocation10 + $0x40] sm:$0xff] }
  0x61   : > { %1911 = vmatpush.msra.mxu2 %v679_v31  ;;  %746 = vmatpush.msra.mxu0 %v679_v31  ;;  %v1116_v31 = vld [vmem:[#allocation10 + $0x70] sm:$0xff] }
  0x62   : > { %1927 = vmatpush.msra.mxu3 %v695_v33  ;;  %795 = vmatmul.f32.vlgmr.msra.gmra.mxu2 %v566_v32  ;;  %v1133_v32 = vld [vmem:[#allocation10 + $0xf8] sm:$0xff] }
  0x63   : > { %908 = vmatmul.f32.vlgmr.msra.gmra.mxu3 %v598_v34  ;;  %957 = vmatpush.msrb.mxu2 %v726_v35  ;;  %v1149_v34 = vld [vmem:[#allocation10 + $0x178] sm:$0xff]  ;;  %v547_v35 = vld [vmem:[%s2508_s17 + $0xf0] sm:$0xff] }
  0x64   : > { %859 = vmatpush.msra.mxu1 %v695_v33  ;;  %1154 = vmatpush.msrb.mxu3 %v1117_v24  ;;  %v551_v33 = vmul.f32 0.0, %v518_v30  ;;  %v580_v37 = vmul.f32 0.0, %v547_v35  ;;  %v618_v24 = vld [vmem:[%s2523_s19 + $0x20] sm:$0xff] }
  0x65   : > { %958 = vmatpush.msrb.mxu2 %v725_v36  ;;  %747 = vmatmul.f32.vlgmr.msra.gmra.mxu0 %v550_v25  ;;  %v583_v36 = vld [vmem:[%s2516_s18 + $0x8] sm:$0xff]  ;;  %v1126_v30 = vld [vmem:[#allocation10 + $0xc0] sm:$0xff] }
  0x66   : > { %860 = vmatmul.f32.vlgmr.msra.gmra.mxu1 %v582_v27  ;;  %1155 = vmatpush.msrb.mxu3 %v1116_v31  ;;  %v651_v27 = vmul.f32 0.0, %v618_v24  ;;  %v590_v35 = vld [vmem:[%s2516_s18 + $0x40] sm:$0xff]  ;;  %v1103_v24 = vld [vmem:[#allocation10 + $0x8] sm:$0xff] }
  0x67   : > { %959 = vmatpush.msrb.mxu2 %v724_v38  ;;  %1267 = vmatpush.msrb.mxu0 %v1133_v32  ;;  %v612_v38 = vld [vmem:[%s2516_s18 + $0xf0] sm:$0xff]  ;;  %v1142_v32 = vld [vmem:[#allocation10 + $0x140] sm:$0xff] }
  0x68   : > { %1380 = vmatpush.msrb.mxu1 %v1149_v34 }
  0x69   : > { %960 = vmatpush.msrb.mxu2 %v723_v40  ;;  %v1115_v40 = vld [vmem:[#allocation10 + $0x68] sm:$0xff] }
  0x6a   : > { %798 = vmatmul.f32.gmra.mxu2 %v567_v39  ;;  %v519_v39 = vld [vmem:[%s2508_s17 + $0x10] sm:$0xff]  ;;  %1156 = vmatpush.msrb.mxu3 %v1115_v40 }
  0x6b   : > { %911 = vmatmul.f32.gmra.mxu3 %v599_v41  ;;  %961 = vmatpush.msrb.mxu2 %v722_v42  ;;  %v1132_v41 = vld [vmem:[#allocation10 + $0xf0] sm:$0xff]  ;;  %v552_v42 = vmul.f32 0.0, %v519_v39  ;;  %v1125_v39 = vld [vmem:[#allocation10 + $0xb8] sm:$0xff] }
  0x6c   : > { %1268 = vmatpush.msrb.mxu0 %v1132_v41  ;;  %v1141_v41 = vld [vmem:[#allocation10 + $0x138] sm:$0xff] }
  0x6d   : > { %962 = vmatpush.msrb.mxu2 %v721_v43  ;;  %750 = vmatmul.f32.gmra.mxu0 %v551_v33  ;;  %v1148_v43 = vld [vmem:[#allocation10 + $0x170] sm:$0xff]  ;;  %v619_v33 = vld [vmem:[%s2523_s19 + $0x28] sm:$0xff] }
  0x6e   : > { %863 = vmatmul.f32.gmra.mxu1 %v583_v36  ;;  %v652_v36 = vmul.f32 0.0, %v619_v33  ;;  %v532_v33 = vld [vmem:[%s2508_s17 + $0x78] sm:$0xff] }
  0x6f   : > { %963 = vmatpush.msrb.mxu2 %v720_v47  ;;  %1381 = vmatpush.msrb.mxu1 %v1148_v43  ;;  %v613_v47 = vld [vmem:[%s2516_s18 + $0xf8] sm:$0xff] }
  0x71   : > { %964 = vmatpush.msrb.mxu2 %v719_v51  ;;  %v553_v51 = vmul.f32 0.0, %v520_v48  ;;  %1382 = vmatpush.msrb.mxu1 %v1147_v52  ;;  %v1124_v48 = vld [vmem:[#allocation10 + $0xb0] sm:$0xff] }
  0x72   : > { %801 = vmatmul.f32.gmra.mxu2 %v568_v45  ;;  %v584_v45 = vld [vmem:[%s2516_s18 + $0x10] sm:$0xff] }
  0x73   : > { %914 = vmatmul.f32.gmra.mxu3 %v600_v46  ;;  %965 = vmatpush.msrb.mxu2 %v718_v55  ;;  %v581_v46 = vmul.f32 0.0, %v548_v44  ;;  %v591_v44 = vld [vmem:[%s2516_s18 + $0x48] sm:$0xff] }
  0x74   : > { %1383 = vmatpush.msrb.mxu1 %v1146_v60  ;;  %v622_v60 = vld [vmem:[%s2523_s19 + $0x40] sm:$0xff] }
  0x75   : > { %966 = vmatpush.msrb.mxu2 %v717_v59  ;;  %753 = vmatmul.f32.gmra.mxu0 %v552_v42  ;;  %v554_v59 = vmul.f32 0.0, %v521_v56  ;;  %v620_v42 = vld [vmem:[%s2523_s19 + $0x30] sm:$0xff]  ;;  %v1106_v56 = vld [vmem:[#allocation10 + $0x20] sm:$0xff] }
  0x76   : > { %866 = vmatmul.f32.gmra.mxu1 %v584_v45  ;;  %v653_v45 = vmul.f32 0.0, %v620_v42  ;;  %v597_v42 = vld [vmem:[%s2516_s18 + $0x78] sm:$0xff] }
  0x77   : > { %967 = vmatpush.msrb.mxu2 %v716_v63  ;;  %v586_v63 = vld [vmem:[%s2516_s18 + $0x20] sm:$0xff] }
  0x79   : > { %968 = vmatpush.msrb.mxu2 %v715_v3  ;;  %v1129_v3 = vld [vmem:[#allocation10 + $0xd8] sm:$0xff] }
  0x7a   : > { %804 = vmatmul.f32.gmra.mxu2 %v569_v49  ;;  %v1114_v49 = vld [vmem:[#allocation10 + $0x60] sm:$0xff] }
  0x7b   : > { %917 = vmatmul.f32.gmra.mxu3 %v601_v50  ;;  %969 = vmatpush.msrb.mxu2 %v714_v7  ;;  %v1131_v50 = vld [vmem:[#allocation10 + $0xe8] sm:$0xff] }
  0x7c   : > { %1157 = vmatpush.msrb.mxu3 %v1114_v49  ;;  %1269 = vmatpush.msrb.mxu0 %v1131_v50  ;;  %v1140_v50 = vld [vmem:[#allocation10 + $0x130] sm:$0xff] }
  0x7d   : > { %970 = vmatpush.msrb.mxu2 %v713_v11  ;;  %756 = vmatmul.f32.gmra.mxu0 %v553_v51  ;;  %v1111_v11 = vld [vmem:[#allocation10 + $0x48] sm:$0xff]  ;;  %v621_v51 = vld [vmem:[%s2523_s19 + $0x38] sm:$0xff] }
  0x7f   : > { %971 = vmatpush.msrb.mxu2 %v712_v15  ;;  %v617_v15 = vld [vmem:[%s2523_s19 + $0x18] sm:$0xff] }
  0x81   : > { %972 = vmatpush.msrb.mxu2 %v711_v19  ;;  %v524_v19 = vld [vmem:[%s2508_s17 + $0x38] sm:$0xff] }
  0x82   : > { %807 = vmatmul.f32.gmra.mxu2 %v570_v53  ;;  %v614_v53 = vld [vmem:[%s2523_s19] sm:$0xff] }
  0x83   : > { %920 = vmatmul.f32.gmra.mxu3 %v602_v54  ;;  %v585_v54 = vld [vmem:[%s2516_s18 + $0x18] sm:$0xff]  ;;  %v647_v55 = vmul.f32 0.0, %v614_v53  ;;  %v592_v53 = vld [vmem:[%s2516_s18 + $0x50] sm:$0xff] }
  0x84   : > { %869 = vmatmul.f32.gmra.mxu1 %v585_v54  ;;  %v654_v54 = vmul.f32 0.0, %v621_v51 }
  0x85   : > { %759 = vmatmul.f32.gmra.mxu0 %v554_v59  ;;  %v1139_v59 = vld [vmem:[#allocation10 + $0x128] sm:$0xff] }
  0x8a   : > { %810 = vmatmul.f32.gmra.mxu2 %v571_v57  ;;  %v1113_v57 = vld [vmem:[#allocation10 + $0x58] sm:$0xff] }
  0x8b   : > { %923 = vmatmul.f32.gmra.mxu3 %v603_v58  ;;  %v1130_v58 = vld [vmem:[#allocation10 + $0xe0] sm:$0xff] }
  0x8c   : > { %1158 = vmatpush.msrb.mxu3 %v1113_v57  ;;  %1270 = vmatpush.msrb.mxu0 %v1130_v58  ;;  %v1123_v57 = vld [vmem:[#allocation10 + $0xa8] sm:$0xff] }
  0x8d   : > { %872 = vmatmul.f32.gmra.mxu1 %v586_v63  ;;  %v593_v63 = vld [vmem:[%s2516_s18 + $0x58] sm:$0xff] }
  0x8e   : > { %1271 = vmatpush.msrb.mxu0 %v1129_v3  ;;  %v1122_v3 = vld [vmem:[#allocation10 + $0xa0] sm:$0xff] }
  0x90   : > { %1272 = vmatpush.msrb.mxu0 %v1128_v12  ;;  %v530_v12 = vld [vmem:[%s2508_s17 + $0x68] sm:$0xff] }
  0x92   : > { %813 = vmatmul.f32.gmra.mxu2 %v572_v61  ;;  %v615_v61 = vld [vmem:[%s2523_s19 + $0x8] sm:$0xff] }
  0x93   : > { %926 = vmatmul.f32.gmra.mxu3 %v604_v62  ;;  %v648_v0 = vmul.f32 0.0, %v615_v61 }
  0x95   : > { %875 = vmatmul.f32.gmra.mxu1 %v587_v8 }
  0x9a   : > { %816 = vmatmul.f32.gmra.mxu2 %v573_v1  ;;  %v522_v1 = vld [vmem:[%s2508_s17 + $0x28] sm:$0xff] }
  0x9b   : > { %929 = vmatmul.f32.gmra.mxu3 %v605_v2  ;;  %v1112_v2 = vld [vmem:[#allocation10 + $0x50] sm:$0xff]  ;;  %v555_v4 = vmul.f32 0.0, %v522_v1  ;;  %v529_v1 = vld [vmem:[%s2508_s17 + $0x60] sm:$0xff] }
  0x9c   : > { %1159 = vmatpush.msrb.mxu3 %v1112_v2  ;;  %v1105_v2 = vld [vmem:[#allocation10 + $0x18] sm:$0xff] }
  0x9d   : > { %762 = vmatmul.f32.gmra.mxu0 %v555_v4  ;;  %v562_v4 = vmul.f32 0.0, %v529_v1 }
  0x9e   : > { %1160 = vmatpush.msrb.mxu3 %v1111_v11 }
  0xa0   : > { %1161 = vmatpush.msrb.mxu3 %v1110_v20  ;;  %v595_v20 = vld [vmem:[%s2516_s18 + $0x68] sm:$0xff] }
  0xa2   : > { %819 = vmatmul.f32.gmra.mxu2 %v574_v5  ;;  %v1145_v5 = vld [vmem:[#allocation10 + $0x158] sm:$0xff] }
  0xa3   : > { %932 = vmatmul.f32.gmra.mxu3 %v606_v6  ;;  %v616_v6 = vld [vmem:[%s2523_s19 + $0x10] sm:$0xff]  ;;  %1384 = vmatpush.msrb.mxu1 %v1145_v5  ;;  %v1138_v5 = vld [vmem:[#allocation10 + $0x120] sm:$0xff] }
  0xaa   : > { %822 = vmatmul.f32.gmra.mxu2 %v575_v9  ;;  %v649_v9 = vmul.f32 0.0, %v616_v6  ;;  %v623_v6 = vld [vmem:[%s2523_s19 + $0x48] sm:$0xff] }
  0xab   : > { %935 = vmatmul.f32.gmra.mxu3 %v607_v10  ;;  %v523_v10 = vld [vmem:[%s2508_s17 + $0x30] sm:$0xff] }
  0xb2   : > { %825 = vmatmul.f32.gmra.mxu2 %v576_v13  ;;  %v556_v13 = vmul.f32 0.0, %v523_v10  ;;  %v656_v10 = vmul.f32 0.0, %v623_v6 }
  0xb3   : > { %938 = vmatmul.f32.gmra.mxu3 %v608_v14  ;;  %v1144_v14 = vld [vmem:[#allocation10 + $0x150] sm:$0xff] }
  0xb4   : > { %765 = vmatmul.f32.gmra.mxu0 %v556_v13  ;;  %1385 = vmatpush.msrb.mxu1 %v1144_v14  ;;  %v1104_v13 = vld [vmem:[#allocation10 + $0x10] sm:$0xff]  ;;  %v1121_v14 = vld [vmem:[#allocation10 + $0x98] sm:$0xff] }
  0xb6   : > { %1386 = vmatpush.msrb.mxu1 %v1143_v23  ;;  %v531_v23 = vld [vmem:[%s2508_s17 + $0x70] sm:$0xff] }
  0xb8   : > { %1387 = vmatpush.msrb.mxu1 %v1142_v32 }
  0xba   : > { %828 = vmatmul.f32.gmra.mxu2 %v577_v17  ;;  %v588_v17 = vld [vmem:[%s2516_s18 + $0x30] sm:$0xff]  ;;  %1388 = vmatpush.msrb.mxu1 %v1141_v41 }
  0xbb   : > { %941 = vmatmul.f32.gmra.mxu3 %v609_v18  ;;  %v650_v18 = vmul.f32 0.0, %v617_v15  ;;  %878 = vmatmul.f32.gmra.mxu1 %v588_v17  ;;  %v563_v15 = vmul.f32 0.0, %v530_v12  ;;  %v1137_v17 = vld [vmem:[#allocation10 + $0x118] sm:$0xff] }
  0xbc   : > { %1389 = vmatpush.msrb.mxu1 %v1140_v50 }
  0xbe   : > { %1390 = vmatpush.msrb.mxu1 %v1139_v59 }
  0xc0   : > { %1391 = vmatpush.msrb.mxu1 %v1138_v5  ;;  %v630_v5 = vld [vmem:[%s2523_s19 + $0x80] sm:$0xff] }
  0xc2   : > { %831 = vmatmul.f32.gmra.mxu2 %v578_v21  ;;  %v1127_v21 = vld [vmem:[#allocation10 + $0xc8] sm:$0xff]  ;;  %1392 = vmatpush.msrb.mxu1 %v1137_v17 }
  0xc3   : > { %944 = vmatmul.f32.gmra.mxu3 %v610_v22  ;;  %v557_v22 = vmul.f32 0.0, %v524_v19  ;;  %1273 = vmatpush.msrb.mxu0 %v1127_v21 }
  0xc4   : > { %881 = vmatmul.f32.gmra.mxu1 %v589_v26  ;;  %v1120_v26 = vld [vmem:[#allocation10 + $0x90] sm:$0xff] }
  0xc5   : > { %768 = vmatmul.f32.gmra.mxu0 %v557_v22 }
  0xc6   : > { %1274 = vmatpush.msrb.mxu0 %v1126_v30 }
  0xc8   : > { %1275 = vmatpush.msrb.mxu0 %v1125_v39 }
  0xca   : > { %834 = vmatmul.f32.gmra.mxu2 %v579_v28  ;;  %v525_v28 = vld [vmem:[%s2508_s17 + $0x40] sm:$0xff]  ;;  %1276 = vmatpush.msrb.mxu0 %v1124_v48 }
  0xcb   : > { %947 = vmatmul.f32.gmra.mxu3 %v611_v29  ;;  %v1109_v29 = vld [vmem:[#allocation10 + $0x38] sm:$0xff]  ;;  %v558_v31 = vmul.f32 0.0, %v525_v28  ;;  %v1136_v28 = vld [vmem:[#allocation10 + $0x110] sm:$0xff]  ;;  %v1134_v48 = vld [vmem:[#allocation10 + $0x100] sm:$0xff] }
  0xcc   : > { %1162 = vmatpush.msrb.mxu3 %v1109_v29  ;;  %884 = vmatmul.f32.gmra.mxu1 %v590_v35  ;;  %v625_v29 = vld [vmem:[%s2523_s19 + $0x58] sm:$0xff]  ;;  %v1102_v35 = vld [vmem:[#allocation10] sm:$0xff] }
  0xcd   : > { %771 = vmatmul.f32.gmra.mxu0 %v558_v31  ;;  %1393 = vmatpush.msrb.mxu1 %v1136_v28  ;;  %v596_v31 = vld [vmem:[%s2516_s18 + $0x70] sm:$0xff]  ;;  %v658_v32 = vmul.f32 0.0, %v625_v29 }
  0xce   : > { %1277 = vmatpush.msrb.mxu0 %v1123_v57 }
  0xd0   : > { %1278 = vmatpush.msrb.mxu0 %v1122_v3 }
  0xd2   : > { %837 = vmatmul.f32.gmra.mxu2 %v580_v37  ;;  %v526_v37 = vld [vmem:[%s2508_s17 + $0x48] sm:$0xff]  ;;  %1279 = vmatpush.msrb.mxu0 %v1121_v14  ;;  %v663_v14 = vmul.f32 0.0, %v630_v5 }
  0xd3   : > { %950 = vmatmul.f32.gmra.mxu3 %v612_v38  ;;  %v1108_v38 = vld [vmem:[#allocation10 + $0x30] sm:$0xff]  ;;  %v559_v40 = vmul.f32 0.0, %v526_v37  ;;  %v565_v37 = vmul.f32 0.0, %v532_v33 }
  0xd4   : > { %1163 = vmatpush.msrb.mxu3 %v1108_v38  ;;  %887 = vmatmul.f32.gmra.mxu1 %v591_v44  ;;  %v1135_v38 = vld [vmem:[#allocation10 + $0x108] sm:$0xff] }
  0xd5   : > { %774 = vmatmul.f32.gmra.mxu0 %v559_v40  ;;  %v626_v40 = vld [vmem:[%s2523_s19 + $0x60] sm:$0xff]  ;;  %1394 = vmatpush.msrb.mxu1 %v1135_v38 }
  0xd6   : > { %1280 = vmatpush.msrb.mxu0 %v1120_v26  ;;  %v659_v44 = vmul.f32 0.0, %v626_v40 }
  0xd7   : > { %1395 = vmatpush.msrb.mxu1 %v1134_v48 }
  0xda   : > { %840 = vmatmul.f32.gmra.mxu2 %v581_v46  ;;  %v527_v46 = vld [vmem:[%s2508_s17 + $0x50] sm:$0xff] }
  0xdb   : > { %953 = vmatmul.f32.gmra.mxu3 %v613_v47  ;;  %v1107_v47 = vld [vmem:[#allocation10 + $0x28] sm:$0xff]  ;;  %v560_v49 = vmul.f32 0.0, %v527_v46  ;;  %v2311_v46 = vmov 0.0  }
  0xdc   : > { %1164 = vmatpush.msrb.mxu3 %v1107_v47  ;;  %890 = vmatmul.f32.gmra.mxu1 %v592_v53  ;;  %v1118_v47 = vld [vmem:[#allocation10 + $0x80] sm:$0xff] }
  0xdd   : > { %777 = vmatmul.f32.gmra.mxu0 %v560_v49  ;;  %v627_v49 = vld [vmem:[%s2523_s19 + $0x68] sm:$0xff] }
  0xde   : > { %1165 = vmatpush.msrb.mxu3 %v1106_v56  ;;  %v628_v56 = vld [vmem:[%s2523_s19 + $0x70] sm:$0xff] }
  0xdf   : > { %v661_v59 = vmul.f32 0.0, %v628_v56 }
  0xe0   : > { %1166 = vmatpush.msrb.mxu3 %v1105_v2 }
  0xe2   : > { %973 = vmatmul.f32.vlgmr.msrb.gmra.mxu2 %v647_v55  ;;  %v528_v55 = vld [vmem:[%s2508_s17 + $0x58] sm:$0xff]  ;;  %1167 = vmatpush.msrb.mxu3 %v1104_v13 }
  0xe3   : > { %v561_v58 = vmul.f32 0.0, %v528_v55  ;;  %v861_v50 = vpop.f32.mrf.mxu1 }
  0xe4   : > { %893 = vmatmul.f32.gmra.mxu1 %v593_v63  ;;  %1168 = vmatpush.msrb.mxu3 %v1103_v24 }
  0xe5   : > { %v2572_v62 = vpop.f32.mrf.mxu2  ;;  %780 = vmatmul.f32.gmra.mxu0 %v561_v58 }
  0xe6   : > { %v2615_v11 = vpop.f32.mrf.mxu3  ;;  %1169 = vmatpush.msrb.mxu3 %v1102_v35 }
  0xe7   : > { %1170 = vmatmul.f32.vlgmr.msrb.gmra.mxu3 %v2311_v46 }
  0xea   : > { %976 = vmatmul.f32.gmra.mxu2 %v648_v0  ;;  %v655_v0 = vmul.f32 0.0, %v622_v60 }
  0xeb   : > { %v864_v57 = vpop.f32.mrf.mxu1 }
  0xed   : > { %v2577_v7 = vpop.f32.mrf.mxu2  ;;  %783 = vmatmul.f32.gmra.mxu0 %v562_v4 }
  0xee   : > { %v2622_v22 = vpop.f32.mrf.mxu3 }
  0xef   : > { %1173 = vmatmul.f32.gmra.mxu3 %v2311_v46 }
  0xf2   : > { %979 = vmatmul.f32.gmra.mxu2 %v649_v9  ;;  %v594_v9 = vld [vmem:[%s2516_s18 + $0x60] sm:$0xff] }
  0xf3   : > { %896 = vmatmul.f32.gmra.mxu1 %v594_v9  ;;  %v867_v1 = vpop.f32.mrf.mxu1 }
  0xf5   : > { %v2582_v16 = vpop.f32.mrf.mxu2  ;;  %786 = vmatmul.f32.gmra.mxu0 %v563_v15 }
  0xf6   : > { %v2630_v39 = vpop.f32.mrf.mxu3 }
  0xf7   : > { %1176 = vmatmul.f32.gmra.mxu3 %v2311_v46 }
  0xfa   : > { %982 = vmatmul.f32.gmra.mxu2 %v650_v18  ;;  %v624_v18 = vld [vmem:[%s2523_s19 + $0x50] sm:$0xff] }
  0xfb   : > { %v657_v21 = vmul.f32 0.0, %v624_v18  ;;  %899 = vmatmul.f32.gmra.mxu1 %v595_v20  ;;  %v631_v18 = vld [vmem:[%s2523_s19 + $0x88] sm:$0xff] }
  0xfd   : > { %v2587_v25 = vpop.f32.mrf.mxu2 }
  0xfe   : > { %v2638_v51 = vpop.f32.mrf.mxu3 }
  0xff   : > { %1179 = vmatmul.f32.gmra.mxu3 %v2311_v46 }
 0x101   : > { %v870_v9 = vpop.f32.mrf.mxu1 }
 0x102   : > { %985 = vmatmul.f32.gmra.mxu2 %v651_v27  ;;  %v564_v27 = vmul.f32 0.0, %v531_v23 }
 0x103   : > { %902 = vmatmul.f32.gmra.mxu1 %v596_v31  ;;  %v632_v31 = vld [vmem:[%s2523_s19 + $0x90] sm:$0xff] }
 0x104   : > { %789 = vmatmul.f32.gmra.mxu0 %v564_v27  ;;  %v664_v27 = vmul.f32 0.0, %v631_v18  ;;  %v665_v38 = vmul.f32 0.0, %v632_v31  ;;  %v635_v18 = vld [vmem:[%s2523_s19 + $0xa8] sm:$0xff] }
 0x105   : > { %v2592_v34 = vpop.f32.mrf.mxu2 }
 0x106   : > { %v2648_v60 = vpop.f32.mrf.mxu3 }
 0x107   : > { %1182 = vmatmul.f32.gmra.mxu3 %v2311_v46 }
 0x10a   : > { %988 = vmatmul.f32.gmra.mxu2 %v652_v36  ;;  %v1119_v36 = vld [vmem:[#allocation10 + $0x88] sm:$0xff]  ;;  %v873_v20 = vpop.f32.mrf.mxu1 }
 0x10b   : > { %1281 = vmatpush.msrb.mxu0 %v1119_v36  ;;  %905 = vmatmul.f32.gmra.mxu1 %v597_v42 }
 0x10c   : > { %792 = vmatmul.f32.gmra.mxu0 %v565_v37 }
 0x10d   : > { %v2597_v43 = vpop.f32.mrf.mxu2  ;;  %1282 = vmatpush.msrb.mxu0 %v1118_v47 }
 0x10e   : > { %v2655_v4 = vpop.f32.mrf.mxu3 }
 0x10f   : > { %1185 = vmatmul.f32.gmra.mxu3 %v2311_v46 }
 0x112   : > { %991 = vmatmul.f32.gmra.mxu2 %v653_v45  ;;  %v748_v45 = vpop.f32.mrf.mxu0 }
 0x113   : > { %1396 = vmatmul.f32.vlgmr.msrb.gmra.mxu1 %v2311_v46 }
 0x115   : > { %v2602_v52 = vpop.f32.mrf.mxu2 }
 0x116   : > { %v2669_v17 = vpop.f32.mrf.mxu3 }
 0x117   : > { %1188 = vmatmul.f32.gmra.mxu3 %v2311_v46 }
 0x11a   : > { %994 = vmatmul.f32.gmra.mxu2 %v654_v54  ;;  %v660_v54 = vmul.f32 0.0, %v627_v49  ;;  %v751_v55 = vpop.f32.mrf.mxu0 }
 0x11b   : > { %1399 = vmatmul.f32.gmra.mxu1 %v2311_v46 }
 0x11d   : > { %v2607_v61 = vpop.f32.mrf.mxu2 }
 0x11e   : > { %v2676_v33 = vpop.f32.mrf.mxu3 }
 0x11f   : > { %1191 = vmatmul.f32.gmra.mxu3 %v2311_v46 }
 0x122   : > { %997 = vmatmul.f32.gmra.mxu2 %v655_v0  ;;  %v754_v63 = vpop.f32.mrf.mxu0  ;;  %v629_v0 = vld [vmem:[%s2523_s19 + $0x78] sm:$0xff] }
 0x123   : > { %v662_v3 = vmul.f32 0.0, %v629_v0  ;;  %1402 = vmatmul.f32.gmra.mxu1 %v2311_v46 }
 0x125   : > { %v2612_v8 = vpop.f32.mrf.mxu2 }
 0x127   : > { %1194 = vmatmul.f32.gmra.mxu3 %v2311_v46 }
 0x12a   : > { %1000 = vmatmul.f32.gmra.mxu2 %v656_v10  ;;  %v757_v6 = vpop.f32.mrf.mxu0  ;;  %v2662_v10 = vld [vmem:[%s3025_s4] ss:$0 sm:$0xff] }
 0x12b   : > { %v749_v13 = vadd.f32 %v2662_v10, %v748_v45  ;;  %1405 = vmatmul.f32.gmra.mxu1 %v2311_v46  ;;  %v752_v26 = vadd.f32 %v2662_v10, %v751_v55  ;;  %v755_v37 = vadd.f32 %v2662_v10, %v754_v63  ;;  %v633_v45 = vld [vmem:[%s2523_s19 + $0x98] sm:$0xff]  ;;  %v2684_v55 = vpop.f32.mrf.mxu3  ;;  %v634_v63 = vld [vmem:[%s2523_s19 + $0xa0] sm:$0xff] }
 0x12d   : > { %v2619_v19 = vpop.f32.mrf.mxu2  ;;  %v862_v15 = vadd.f32 %v861_v50, %v749_v13  ;;  %v865_v29 = vadd.f32 %v864_v57, %v752_v26  ;;  %v758_v50 = vadd.f32 %v2662_v10, %v757_v6  ;;  %v667_v6 = vmul.f32 0.0, %v634_v63 }
 0x12f   : > { %1197 = vmatmul.f32.gmra.mxu3 %v2311_v46 }
 0x132   : > { %1003 = vmatmul.f32.gmra.mxu2 %v657_v21  ;;  %v760_v23 = vpop.f32.mrf.mxu0 }
 0x133   : > { %1408 = vmatmul.f32.gmra.mxu1 %v2311_v46  ;;  %v761_v5 = vadd.f32 %v2662_v10, %v760_v23  ;;  %v668_v23 = vmul.f32 0.0, %v635_v18 }
 0x135   : > { %v2626_v30 = vpop.f32.mrf.mxu2 }
 0x137   : > { %1200 = vmatmul.f32.gmra.mxu3 %v2311_v46 }
 0x13a   : > { %1006 = vmatmul.f32.gmra.mxu2 %v658_v32  ;;  %v876_v32 = vpop.f32.mrf.mxu1  ;;  %v763_v40 = vpop.f32.mrf.mxu0 }
 0x13b   : > { %1411 = vmatmul.f32.gmra.mxu1 %v2311_v46 }
 0x13d   : > { %v2633_v41 = vpop.f32.mrf.mxu2 }
 0x13f   : > { %1203 = vmatmul.f32.gmra.mxu3 %v2311_v46 }
 0x142   : > { %1009 = vmatmul.f32.gmra.mxu2 %v659_v44  ;;  %v868_v44 = vadd.f32 %v867_v1, %v755_v37  ;;  %v879_v47 = vpop.f32.mrf.mxu1  ;;  %v766_v57 = vpop.f32.mrf.mxu0 }
 0x143   : > { %1414 = vmatmul.f32.gmra.mxu1 %v2311_v46 }
 0x145   : > { %v2640_v53 = vpop.f32.mrf.mxu2 }
 0x147   : > { %1206 = vmatmul.f32.gmra.mxu3 %v2311_v46 }
 0x14a   : > { %1012 = vmatmul.f32.gmra.mxu2 %v660_v54  ;;  %v666_v54 = vmul.f32 0.0, %v633_v45  ;;  %v882_v0 = vpop.f32.mrf.mxu1 }
 0x14b   : > { %1417 = vmatmul.f32.gmra.mxu1 %v2311_v46 }
 0x14d   : > { %v2645_v58 = vpop.f32.mrf.mxu2 }
 0x14f   : > { %1209 = vmatmul.f32.gmra.mxu3 %v2311_v46 }
 0x152   : > { %1015 = vmatmul.f32.gmra.mxu2 %v661_v59  ;;  %v871_v59 = vadd.f32 %v870_v9, %v758_v50  ;;  %v769_v9 = vpop.f32.mrf.mxu0 }
 0x153   : > { %1420 = vmatmul.f32.gmra.mxu1 %v2311_v46 }
 0x155   : > { %v2652_v2 = vpop.f32.mrf.mxu2 }
 0x157   : > { %1212 = vmatmul.f32.gmra.mxu3 %v2311_v46 }
 0x15a   : > { %1018 = vmatmul.f32.gmra.mxu2 %v662_v3  ;;  %v772_v37 = vpop.f32.mrf.mxu0 }
 0x15b   : > { %1423 = vmatmul.f32.gmra.mxu1 %v2311_v46 }
 0x15d   : > { %v2664_v12 = vpop.f32.mrf.mxu2 }
 0x15f   : > { %1215 = vmatmul.f32.gmra.mxu3 %v2311_v46 }
 0x162   : > { %1021 = vmatmul.f32.gmra.mxu2 %v663_v14  ;;  %v2690_v14 = vpop.f32.mrf.mxu3 }
 0x163   : > { %1426 = vmatmul.f32.gmra.mxu1 %v2311_v46 }
 0x165   : > { %v974_v21 = vpop.f32.mrf.mxu2 }
 0x166   : > { %v975_v24 = vadd.f32 %v974_v21, %v862_v15  ;;  %v874_v15 = vadd.f32 %v873_v20, %v761_v5  ;;  %v885_v21 = vpop.f32.mrf.mxu1  ;;  %v636_v20 = vld [vmem:[%s2523_s19 + $0xb0] sm:$0xff] }
 0x167   : > { %1218 = vmatmul.f32.gmra.mxu3 %v2311_v46 }
 0x168   : > { %v1070_v28 = vmax.f32 %v975_v24, 0.0 }
 0x16a   : > { %1024 = vmatmul.f32.gmra.mxu2 %v664_v27  ;;  %1283 = vmatmul.f32.vlgmr.msrb.gmra.mxu0 %v1070_v28  ;;  %v764_v27 = vadd.f32 %v2662_v10, %v763_v40  ;;  %v2696_v31 = vpop.f32.mrf.mxu3  ;;  %v669_v40 = vmul.f32 0.0, %v636_v20 }
 0x16b   : > { %1429 = vmatmul.f32.gmra.mxu1 %v2311_v46 }
 0x16d   : > { %v977_v35 = vpop.f32.mrf.mxu2 }
 0x16e   : > { %v978_v36 = vadd.f32 %v977_v35, %v865_v29  ;;  %v877_v29 = vadd.f32 %v876_v32, %v764_v27  ;;  %v888_v35 = vpop.f32.mrf.mxu1  ;;  %v637_v32 = vld [vmem:[%s2523_s19 + $0xb8] sm:$0xff] }
 0x16f   : > { %1221 = vmatmul.f32.gmra.mxu3 %v2311_v46 }
 0x170   : > { %v1071_v42 = vmax.f32 %v978_v36, 0.0 }
 0x172   : > { %1027 = vmatmul.f32.gmra.mxu2 %v665_v38  ;;  %1286 = vmatmul.f32.gmra.mxu0 %v1071_v42  ;;  %v767_v42 = vadd.f32 %v2662_v10, %v766_v57  ;;  %v775_v57 = vpop.f32.mrf.mxu0 }
 0x173   : > { %1432 = vmatmul.f32.gmra.mxu1 %v2311_v46 }
 0x174   : > { %v880_v45 = vadd.f32 %v879_v47, %v767_v42  ;;  %v638_v47 = vld [vmem:[%s2523_s19 + $0xc0] sm:$0xff]  ;;  %v640_v42 = vld [vmem:[%s2523_s19 + $0xd0] sm:$0xff] }
 0x175   : > { %v980_v48 = vpop.f32.mrf.mxu2 }
 0x176   : > { %v981_v49 = vadd.f32 %v980_v48, %v868_v44  ;;  %v891_v48 = vpop.f32.mrf.mxu1 }
 0x177   : > { %1224 = vmatmul.f32.gmra.mxu3 %v2311_v46 }
 0x178   : > { %v1072_v56 = vmax.f32 %v981_v49, 0.0  ;;  %v2704_v49 = vpop.f32.mrf.mxu3 }
 0x17a   : > { %1030 = vmatmul.f32.gmra.mxu2 %v666_v54  ;;  %1289 = vmatmul.f32.gmra.mxu0 %v1072_v56  ;;  %v770_v56 = vadd.f32 %v2662_v10, %v769_v9 }
 0x17b   : > { %1435 = vmatmul.f32.gmra.mxu1 %v2311_v46 }
 0x17d   : > { %v983_v1 = vpop.f32.mrf.mxu2 }
 0x17e   : > { %v984_v3 = vadd.f32 %v983_v1, %v871_v59  ;;  %v670_v59 = vmul.f32 0.0, %v637_v32  ;;  %v883_v1 = vadd.f32 %v882_v0, %v770_v56  ;;  %v639_v0 = vld [vmem:[%s2523_s19 + $0xc8] sm:$0xff] }
 0x17f   : > { %v672_v20 = vmul.f32 0.0, %v639_v0  ;;  %1227 = vmatmul.f32.gmra.mxu3 %v2311_v46 }
 0x180   : > { %v1073_v13 = vmax.f32 %v984_v3, 0.0  ;;  %v894_v3 = vpop.f32.mrf.mxu1  ;;  %v2712_v18 = vpop.f32.mrf.mxu3 }
 0x182   : > { %1033 = vmatmul.f32.gmra.mxu2 %v667_v6  ;;  %1292 = vmatmul.f32.gmra.mxu0 %v1073_v13  ;;  %v773_v13 = vadd.f32 %v2662_v10, %v772_v37 }
 0x183   : > { %1438 = vmatmul.f32.gmra.mxu1 %v2311_v46 }
 0x185   : > { %v986_v24 = vpop.f32.mrf.mxu2 }
 0x186   : > { %v987_v26 = vadd.f32 %v986_v24, %v874_v15  ;;  %v671_v15 = vmul.f32 0.0, %v638_v47  ;;  %v778_v24 = vpop.f32.mrf.mxu0 }
 0x187   : > { %v779_v32 = vadd.f32 %v2662_v10, %v778_v24  ;;  %1230 = vmatmul.f32.gmra.mxu3 %v2311_v46 }
 0x188   : > { %v1074_v28 = vmax.f32 %v987_v26, 0.0  ;;  %v886_v26 = vadd.f32 %v885_v21, %v773_v13  ;;  %v897_v27 = vpop.f32.mrf.mxu1  ;;  %v2718_v37 = vpop.f32.mrf.mxu3 }
 0x189   : > { %v892_v56 = vadd.f32 %v891_v48, %v779_v32  ;;  %v642_v48 = vld [vmem:[%s2523_s19 + $0xe0] sm:$0xff] }
 0x18a   : > { %1036 = vmatmul.f32.gmra.mxu2 %v668_v23  ;;  %1295 = vmatmul.f32.gmra.mxu0 %v1074_v28 }
 0x18b   : > { %1441 = vmatmul.f32.gmra.mxu1 %v2311_v46 }
 0x18d   : > { %v989_v36 = vpop.f32.mrf.mxu2 }
 0x18e   : > { %v990_v38 = vadd.f32 %v989_v36, %v877_v29  ;;  %v776_v29 = vadd.f32 %v2662_v10, %v775_v57  ;;  %v781_v21 = vpop.f32.mrf.mxu0 }
 0x18f   : > { %v782_v47 = vadd.f32 %v2662_v10, %v781_v21  ;;  %1233 = vmatmul.f32.gmra.mxu3 %v2311_v46 }
 0x190   : > { %v1075_v44 = vmax.f32 %v990_v38, 0.0  ;;  %v889_v38 = vadd.f32 %v888_v35, %v776_v29  ;;  %v641_v35 = vld [vmem:[%s2523_s19 + $0xd8] sm:$0xff] }
 0x192   : > { %1039 = vmatmul.f32.gmra.mxu2 %v669_v40  ;;  %1298 = vmatmul.f32.gmra.mxu0 %v1075_v44  ;;  %v900_v40 = vpop.f32.mrf.mxu1 }
 0x193   : > { %1444 = vmatmul.f32.gmra.mxu1 %v2311_v46 }
 0x195   : > { %v992_v50 = vpop.f32.mrf.mxu2 }
 0x196   : > { %v993_v54 = vadd.f32 %v992_v50, %v880_v45  ;;  %v673_v50 = vmul.f32 0.0, %v640_v42 }
 0x198   : > { %v1076_v63 = vmax.f32 %v993_v54, 0.0 }
 0x19a   : > { %1042 = vmatmul.f32.gmra.mxu2 %v670_v59  ;;  %1301 = vmatmul.f32.gmra.mxu0 %v1076_v63  ;;  %v2724_v59 = vpop.f32.mrf.mxu3  ;;  %v784_v63 = vpop.f32.mrf.mxu0 }
 0x19b   : > { %v785_v0 = vadd.f32 %v2662_v10, %v784_v63  ;;  %1447 = vmatmul.f32.gmra.mxu1 %v2311_v46  ;;  %1236 = vmatmul.f32.gmra.mxu3 %v2311_v46 }
 0x19d   : > { %v995_v5 = vpop.f32.mrf.mxu2 }
 0x19e   : > { %v996_v6 = vadd.f32 %v995_v5, %v883_v1  ;;  %v674_v5 = vmul.f32 0.0, %v641_v35  ;;  %v644_v35 = vld [vmem:[%s2523_s19 + $0xf0] sm:$0xff] }
 0x1a0   : > { %v1077_v9 = vmax.f32 %v996_v6, 0.0  ;;  %v903_v6 = vpop.f32.mrf.mxu1 }
 0x1a2   : > { %1045 = vmatmul.f32.gmra.mxu2 %v671_v15  ;;  %1304 = vmatmul.f32.gmra.mxu0 %v1077_v9  ;;  %v895_v15 = vadd.f32 %v894_v3, %v782_v47  ;;  %v2732_v9 = vpop.f32.mrf.mxu3  ;;  %v643_v3 = vld [vmem:[%s2523_s19 + $0xe8] sm:$0xff]  ;;  %v677_v47 = vmul.f32 0.0, %v644_v35 }
 0x1a3   : > { %1450 = vmatmul.f32.gmra.mxu1 %v2311_v46  ;;  %1239 = vmatmul.f32.gmra.mxu3 %v2311_v46 }
 0x1a5   : > { %v998_v23 = vpop.f32.mrf.mxu2 }
 0x1a6   : > { %v999_v28 = vadd.f32 %v998_v23, %v886_v26  ;;  %v675_v23 = vmul.f32 0.0, %v642_v48 }
 0x1a8   : > { %v1078_v36 = vmax.f32 %v999_v28, 0.0  ;;  %v787_v28 = vpop.f32.mrf.mxu0 }
 0x1aa   : > { %1048 = vmatmul.f32.gmra.mxu2 %v672_v20  ;;  %1307 = vmatmul.f32.gmra.mxu0 %v1078_v36  ;;  %v906_v20 = vpop.f32.mrf.mxu1  ;;  %v898_v36 = vadd.f32 %v897_v27, %v785_v0  ;;  %v1171_v42 = vpop.f32.mrf.mxu3 }
 0x1ab   : > { %1453 = vmatmul.f32.gmra.mxu1 %v2311_v46  ;;  %1242 = vmatmul.f32.gmra.mxu3 %v2311_v46 }
 0x1ad   : > { %v1001_v44 = vpop.f32.mrf.mxu2 }
 0x1ae   : > { %v1002_v45 = vadd.f32 %v1001_v44, %v889_v38  ;;  %v788_v44 = vadd.f32 %v2662_v10, %v787_v28 }
 0x1b0   : > { %v1079_v54 = vmax.f32 %v1002_v45, 0.0  ;;  %v676_v45 = vmul.f32 0.0, %v643_v3 }
 0x1b2   : > { %1051 = vmatmul.f32.gmra.mxu2 %v673_v50  ;;  %1310 = vmatmul.f32.gmra.mxu0 %v1079_v54  ;;  %v1397_v50 = vpop.f32.mrf.mxu1  ;;  %v790_v54 = vpop.f32.mrf.mxu0 }
 0x1b3   : > { %1456 = vmatmul.f32.gmra.mxu1 %v2311_v46 }
 0x1b5   : > { %v1004_v57 = vpop.f32.mrf.mxu2 }
 0x1b6   : > { %v1005_v1 = vadd.f32 %v1004_v57, %v892_v56  ;;  %v901_v56 = vadd.f32 %v900_v40, %v788_v44  ;;  %v1174_v57 = vpop.f32.mrf.mxu3  ;;  %v797_v44 = vadd.f32 %v2662_v10, %v2572_v62  ;;  %1245 = vmatmul.f32.gmra.mxu3 %v2311_v46 }
 0x1b8   : > { %v1080_v13 = vmax.f32 %v1005_v1, 0.0  ;;  %v791_v1 = vadd.f32 %v2662_v10, %v790_v54 }
 0x1ba   : > { %1054 = vmatmul.f32.gmra.mxu2 %v674_v5  ;;  %1313 = vmatmul.f32.gmra.mxu0 %v1080_v13  ;;  %v1400_v13 = vpop.f32.mrf.mxu1  ;;  %v793_v48 = vpop.f32.mrf.mxu0 }
 0x1bb   : > { %1459 = vmatmul.f32.gmra.mxu1 %v2311_v46 }
 0x1bd   : > { %v1007_v24 = vpop.f32.mrf.mxu2 }
 0x1be   : > { %v1008_v26 = vadd.f32 %v1007_v24, %v895_v15  ;;  %v904_v15 = vadd.f32 %v903_v6, %v791_v1  ;;  %v645_v24 = vld [vmem:[%s2523_s19 + $0xf8] sm:$0xff]  ;;  %v800_v1 = vadd.f32 %v2662_v10, %v2577_v7 }
 0x1bf   : > { %v678_v28 = vmul.f32 0.0, %v645_v24 }
 0x1c0   : > { %v1081_v29 = vmax.f32 %v1008_v26, 0.0  ;;  %v1177_v26 = vpop.f32.mrf.mxu3  ;;  %1248 = vmatmul.f32.gmra.mxu3 %v2311_v46 }
 0x1c2   : > { %1057 = vmatmul.f32.gmra.mxu2 %v675_v23  ;;  %1316 = vmatmul.f32.gmra.mxu0 %v1081_v29  ;;  %v794_v23 = vadd.f32 %v2662_v10, %v793_v48 }
 0x1c3   : > { %1462 = vmatmul.f32.gmra.mxu1 %v2311_v46 }
 0x1c4   : > { %v907_v3 = vadd.f32 %v906_v20, %v794_v23  ;;  %v910_v20 = vadd.f32 %v2615_v11, %v797_v44  ;;  %v913_v11 = vadd.f32 %v2622_v22, %v800_v1 }
 0x1c5   : > { %v1010_v38 = vpop.f32.mrf.mxu2 }
 0x1c6   : > { %v1011_v21 = vadd.f32 %v1010_v38, %v898_v36  ;;  %v1403_v36 = vpop.f32.mrf.mxu1 }
 0x1c8   : > { %v1082_v32 = vmax.f32 %v1011_v21, 0.0  ;;  %v1180_v38 = vpop.f32.mrf.mxu3  ;;  %1251 = vmatmul.f32.gmra.mxu3 %v2311_v46 }
 0x1ca   : > { %1060 = vmatmul.f32.gmra.mxu2 %v676_v45  ;;  %1319 = vmatmul.f32.gmra.mxu0 %v1082_v32  ;;  %v2755_v32 = vld [vmem:[%s3027_s6] ss:$0 sm:$0xff] }
 0x1cb   : > { %v1178_v44 = vadd.f32 %v2755_v32, %v1177_v26  ;;  %1465 = vmatmul.f32.gmra.mxu1 %v2311_v46 }
 0x1cd   : > { %v1013_v27 = vpop.f32.mrf.mxu2 }
 0x1ce   : > { %v1014_v63 = vadd.f32 %v1013_v27, %v901_v56  ;;  %v2757_v54 = vpop.f32.mrf.mxu1  ;;  %v1172_v56 = vadd.f32 %v2755_v32, %v1171_v42  ;;  %v1175_v42 = vadd.f32 %v2755_v32, %v1174_v57 }
 0x1d0   : > { %v1083_v5 = vmax.f32 %v1014_v63, 0.0  ;;  %v2762_v27 = vpop.f32.mrf.mxu3  ;;  %1254 = vmatmul.f32.gmra.mxu3 %v2311_v46 }
 0x1d2   : > { %1063 = vmatmul.f32.gmra.mxu2 %v677_v47  ;;  %1322 = vmatmul.f32.gmra.mxu0 %v1083_v5 }
 0x1d3   : > { %1468 = vmatmul.f32.gmra.mxu1 %v2311_v46 }
 0x1d5   : > { %v1016_v40 = vpop.f32.mrf.mxu2 }
 0x1d6   : > { %v1017_v0 = vadd.f32 %v1016_v40, %v904_v15  ;;  %v2767_v15 = vpop.f32.mrf.mxu1 }
 0x1d8   : > { %v1084_v29 = vmax.f32 %v1017_v0, 0.0  ;;  %v2776_v7 = vpop.f32.mrf.mxu3  ;;  %1257 = vmatmul.f32.gmra.mxu3 %v2311_v46 }
 0x1da   : > { %1066 = vmatmul.f32.gmra.mxu2 %v678_v28  ;;  %1325 = vmatmul.f32.gmra.mxu0 %v1084_v29 }
 0x1db   : > { %1471 = vmatmul.f32.gmra.mxu1 %v2311_v46 }
 0x1dd   : > { %v1019_v6 = vpop.f32.mrf.mxu2 }
 0x1de   : > { %v1020_v21 = vadd.f32 %v1019_v6, %v907_v3  ;;  %v2781_v22 = vpop.f32.mrf.mxu1 }
 0x1e0   : > { %v1085_v45 = vmax.f32 %v1020_v21, 0.0 }
 0x1e2   : > { %1328 = vmatmul.f32.gmra.mxu0 %v1085_v45 }
 0x1e3   : > { %1474 = vmatmul.f32.gmra.mxu1 %v2311_v46 }
 0x1e5   : > { %v1022_v35 = vpop.f32.mrf.mxu2 }
 0x1e6   : > { %v1023_v62 = vadd.f32 %v1022_v35, %v910_v20 }
 0x1e7   : > { %v1284_v63 = vpop.f32.mrf.mxu0 }
 0x1e8   : > { %v1086_v47 = vmax.f32 %v1023_v62, 0.0  ;;  %v1285_v5 = vadd.f32 %v1284_v63, %v1172_v56  ;;  %v2787_v56 = vpop.f32.mrf.mxu3  ;;  %v2792_v63 = vpop.f32.mrf.mxu1  ;;  %1260 = vmatmul.f32.gmra.mxu3 %v2311_v46 }
 0x1ea   : > { %v1398_v48 = vadd.f32 %v1397_v50, %v1285_v5  ;;  %1331 = vmatmul.f32.gmra.mxu0 %v1086_v47  ;;  %v803_v50 = vadd.f32 %v2662_v10, %v2582_v16 }
 0x1eb   : > { %1477 = vmatmul.f32.gmra.mxu1 %v2311_v46 }
 0x1ec   : > { %1493 = vst [vmem:[%s2772_s14] sm:$0xff] %v1398_v48  ;;  %v916_v3 = vadd.f32 %v2630_v39, %v803_v50  ;;  %v1562_v57 = vmul.f32 %v1398_v48, %v1398_v48  ;;  %v806_v39 = vadd.f32 %v2662_v10, %v2587_v25 }
 0x1ed   : > { %v1025_v24 = vpop.f32.mrf.mxu2 }
 0x1ee   : > { %v1026_v40 = vadd.f32 %v1025_v24, %v913_v11  ;;  %v919_v26 = vadd.f32 %v2638_v51, %v806_v39 }
 0x1ef   : > { %v1287_v0 = vpop.f32.mrf.mxu0 }
 0x1f0   : > { %v1087_v23 = vmax.f32 %v1026_v40, 0.0  ;;  %v1288_v28 = vadd.f32 %v1287_v0, %v1175_v42  ;;  %v2798_v25 = vpop.f32.mrf.mxu3  ;;  %v2803_v51 = vpop.f32.mrf.mxu1  ;;  %1263 = vmatmul.f32.gmra.mxu3 %v2311_v46 }
 0x1f2   : > { %v1401_v29 = vadd.f32 %v1400_v13, %v1288_v28  ;;  %1334 = vmatmul.f32.gmra.mxu0 %v1087_v23 }
 0x1f3   : > { %1480 = vmatmul.f32.gmra.mxu1 %v2311_v46 }
 0x1f4   : > { %1494 = vst [vmem:[%s2772_s14 + $0x8] sm:$0xff] %v1401_v29  ;;  %v1525_v6 = vadd.f32 %v1401_v29, %v1398_v48  ;;  %v1563_v21 = vmul.f32 %v1401_v29, %v1401_v29  ;;  %v1181_v48 = vadd.f32 %v2755_v32, %v1180_v38 }
 0x1f5   : > { %v1028_v45 = vpop.f32.mrf.mxu2 }
 0x1f6   : > { %v1594_v16 = vadd.f32 %v1563_v21, %v1562_v57  ;;  %v1029_v20 = vadd.f32 %v1028_v45, %v916_v3  ;;  %v1184_v3 = vadd.f32 %v2755_v32, %v2762_v27 }
 0x1f7   : > { %v1290_v13 = vpop.f32.mrf.mxu0 }
 0x1f8   : > { %v1088_v35 = vmax.f32 %v1029_v20, 0.0  ;;  %v1291_v62 = vadd.f32 %v1290_v13, %v1178_v44  ;;  %v2811_v21 = vpop.f32.mrf.mxu3  ;;  %v812_v44 = vadd.f32 %v2662_v10, %v2597_v43 }
 0x1fa   : > { %v1404_v1 = vadd.f32 %v1403_v36, %v1291_v62  ;;  %1337 = vmatmul.f32.gmra.mxu0 %v1088_v35  ;;  %v809_v36 = vadd.f32 %v2662_v10, %v2592_v34  ;;  %v925_v27 = vadd.f32 %v2655_v4, %v812_v44  ;;  %v1187_v35 = vadd.f32 %v2755_v32, %v2776_v7 }
 0x1fb   : > { %1483 = vmatmul.f32.gmra.mxu1 %v2311_v46 }
 0x1fc   : > { %1495 = vst [vmem:[%s2772_s14 + $0x10] sm:$0xff] %v1404_v1  ;;  %v1526_v47 = vadd.f32 %v1525_v6, %v1404_v1  ;;  %v1564_v5 = vmul.f32 %v1404_v1, %v1404_v1  ;;  %v922_v38 = vadd.f32 %v2648_v60, %v809_v36 }
 0x1fd   : > { %v1031_v11 = vpop.f32.mrf.mxu2 }
 0x1fe   : > { %v1595_v42 = vadd.f32 %v1594_v16, %v1564_v5  ;;  %v1032_v24 = vadd.f32 %v1031_v11, %v919_v26  ;;  %v2816_v16 = vpop.f32.mrf.mxu1 }
 0x1ff   : > { %v1293_v40 = vpop.f32.mrf.mxu0 }
 0x200   : > { %v1089_v50 = vmax.f32 %v1032_v24, 0.0  ;;  %v1294_v0 = vadd.f32 %v1293_v40, %v1181_v48  ;;  %v2824_v26 = vpop.f32.mrf.mxu3  ;;  %v1190_v40 = vadd.f32 %v2755_v32, %v2787_v56 }
 0x202   : > { %v1407_v23 = vadd.f32 %v2757_v54, %v1294_v0  ;;  %1340 = vmatmul.f32.gmra.mxu0 %v1089_v50 }
 0x203   : > { %1486 = vmatmul.f32.gmra.mxu1 %v2311_v46 }
 0x204   : > { %1496 = vst [vmem:[%s2772_s14 + $0x18] sm:$0xff] %v1407_v23  ;;  %v1527_v28 = vadd.f32 %v1526_v47, %v1407_v23  ;;  %v1565_v29 = vmul.f32 %v1407_v23, %v1407_v23  ;;  %v815_v47 = vadd.f32 %v2662_v10, %v2602_v52  ;;  %v818_v23 = vadd.f32 %v2662_v10, %v2607_v61 }
 0x205   : > { %v1034_v57 = vpop.f32.mrf.mxu2 }
 0x206   : > { %v1596_v34 = vadd.f32 %v1595_v42, %v1565_v29  ;;  %v1035_v6 = vadd.f32 %v1034_v57, %v922_v38  ;;  %v2829_v48 = vpop.f32.mrf.mxu1  ;;  %v928_v7 = vadd.f32 %v2669_v17, %v815_v47  ;;  %v931_v56 = vadd.f32 %v2676_v33, %v818_v23 }
 0x207   : > { %v1296_v54 = vpop.f32.mrf.mxu0 }
 0x208   : > { %v1090_v45 = vmax.f32 %v1035_v6, 0.0  ;;  %v1297_v60 = vadd.f32 %v1296_v54, %v1184_v3  ;;  %v2837_v0 = vpop.f32.mrf.mxu3 }
 0x20a   : > { %v1410_v20 = vadd.f32 %v2767_v15, %v1297_v60  ;;  %1343 = vmatmul.f32.gmra.mxu0 %v1090_v45  ;;  %v821_v45 = vadd.f32 %v2662_v10, %v2612_v8 }
 0x20b   : > { %1489 = vmatmul.f32.gmra.mxu1 %v2311_v46 }
 0x20c   : > { %1497 = vst [vmem:[%s2772_s14 + $0x20] sm:$0xff] %v1410_v20  ;;  %v1528_v13 = vadd.f32 %v1527_v28, %v1410_v20  ;;  %v1566_v39 = vmul.f32 %v1410_v20, %v1410_v20 }
 0x20d   : > { %v1037_v62 = vpop.f32.mrf.mxu2 }
 0x20e   : > { %v1597_v43 = vadd.f32 %v1596_v34, %v1566_v39  ;;  %v1038_v1 = vadd.f32 %v1037_v62, %v925_v27  ;;  %v2842_v28 = vpop.f32.mrf.mxu1  ;;  %v1193_v34 = vadd.f32 %v2755_v32, %v2798_v25  ;;  %v934_v25 = vadd.f32 %v2684_v55, %v821_v45 }
 0x20f   : > { %v1299_v15 = vpop.f32.mrf.mxu0 }
 0x210   : > { %v1091_v5 = vmax.f32 %v1038_v1, 0.0  ;;  %v1300_v4 = vadd.f32 %v1299_v15, %v1187_v35  ;;  %v2850_v44 = vpop.f32.mrf.mxu3  ;;  %v1196_v35 = vadd.f32 %v2755_v32, %v2811_v21  ;;  %v824_v15 = vadd.f32 %v2662_v10, %v2619_v19 }
 0x212   : > { %v1413_v11 = vadd.f32 %v2781_v22, %v1300_v4  ;;  %1346 = vmatmul.f32.gmra.mxu0 %v1091_v5  ;;  %v937_v21 = vadd.f32 %v2690_v14, %v824_v15 }
 0x214   : > { %1498 = vst [vmem:[%s2772_s14 + $0x28] sm:$0xff] %v1413_v11  ;;  %v1529_v42 = vadd.f32 %v1528_v13, %v1413_v11  ;;  %v1567_v24 = vmul.f32 %v1413_v11, %v1413_v11 }
 0x215   : > { %v1040_v36 = vpop.f32.mrf.mxu2 }
 0x216   : > { %v1598_v52 = vadd.f32 %v1597_v43, %v1567_v24  ;;  %v1041_v50 = vadd.f32 %v1040_v36, %v928_v7  ;;  %v2855_v20 = vpop.f32.mrf.mxu1 }
 0x217   : > { %v1302_v22 = vpop.f32.mrf.mxu0 }
 0x218   : > { %v1092_v38 = vmax.f32 %v1041_v50, 0.0  ;;  %v1303_v17 = vadd.f32 %v1302_v22, %v1190_v40  ;;  %v2863_v1 = vpop.f32.mrf.mxu3 }
 0x219   : > { %v1208_v46 = vadd.f32 %v2755_v32, %v2863_v1 }
 0x21a   : > { %v1416_v29 = vadd.f32 %v2792_v63, %v1303_v17  ;;  %1349 = vmatmul.f32.gmra.mxu0 %v1092_v38 }
 0x21c   : > { %1499 = vst [vmem:[%s2772_s14 + $0x30] sm:$0xff] %v1416_v29  ;;  %v1530_v3 = vadd.f32 %v1529_v42, %v1416_v29  ;;  %v1568_v57 = vmul.f32 %v1416_v29, %v1416_v29  ;;  %v1199_v42 = vadd.f32 %v2755_v32, %v2824_v26  ;;  %v1202_v29 = vadd.f32 %v2755_v32, %v2837_v0 }
 0x21d   : > { %v1043_v6 = vpop.f32.mrf.mxu2 }
 0x21e   : > { %v1599_v61 = vadd.f32 %v1598_v52, %v1568_v57  ;;  %v1044_v54 = vadd.f32 %v1043_v6, %v931_v56  ;;  %v2868_v5 = vpop.f32.mrf.mxu1  ;;  %v827_v52 = vadd.f32 %v2662_v10, %v2626_v30 }
 0x21f   : > { %v1305_v63 = vpop.f32.mrf.mxu0 }
 0x220   : > { %v1093_v60 = vmax.f32 %v1044_v54, 0.0  ;;  %v1306_v33 = vadd.f32 %v1305_v63, %v1193_v34  ;;  %v2876_v36 = vpop.f32.mrf.mxu3  ;;  %v940_v26 = vadd.f32 %v2696_v31, %v827_v52  ;;  %v830_v34 = vadd.f32 %v2662_v10, %v2633_v41 }
 0x222   : > { %v1419_v27 = vadd.f32 %v2803_v51, %v1306_v33  ;;  %1352 = vmatmul.f32.gmra.mxu0 %v1093_v60  ;;  %v943_v0 = vadd.f32 %v2704_v49, %v830_v34  ;;  %v1205_v60 = vadd.f32 %v2755_v32, %v2850_v44 }
 0x224   : > { %1500 = vst [vmem:[%s2772_s14 + $0x38] sm:$0xff] %v1419_v27  ;;  %v1531_v13 = vadd.f32 %v1530_v3, %v1419_v27  ;;  %v1569_v39 = vmul.f32 %v1419_v27, %v1419_v27 }
 0x225   : > { %v1046_v62 = vpop.f32.mrf.mxu2 }
 0x226   : > { %v1600_v8 = vadd.f32 %v1599_v61, %v1569_v39  ;;  %v1047_v43 = vadd.f32 %v1046_v62, %v934_v25  ;;  %v2881_v22 = vpop.f32.mrf.mxu1 }
 0x227   : > { %v1308_v51 = vpop.f32.mrf.mxu0 }
 0x228   : > { %v1094_v47 = vmax.f32 %v1047_v43, 0.0  ;;  %v1309_v55 = vadd.f32 %v1308_v51, %v1196_v35  ;;  %v2889_v57 = vpop.f32.mrf.mxu3 }
 0x22a   : > { %v1422_v4 = vadd.f32 %v2816_v16, %v1309_v55  ;;  %1355 = vmatmul.f32.gmra.mxu0 %v1094_v47 }
 0x22c   : > { %1501 = vst [vmem:[%s2772_s14 + $0x40] sm:$0xff] %v1422_v4  ;;  %v1532_v11 = vadd.f32 %v1531_v13, %v1422_v4  ;;  %v1570_v7 = vmul.f32 %v1422_v4, %v1422_v4  ;;  %v836_v4 = vadd.f32 %v2662_v10, %v2645_v58 }
 0x22d   : > { %v1049_v24 = vpop.f32.mrf.mxu2 }
 0x22e   : > { %v1601_v19 = vadd.f32 %v1600_v8, %v1570_v7  ;;  %v1050_v40 = vadd.f32 %v1049_v24, %v937_v21  ;;  %v2894_v61 = vpop.f32.mrf.mxu1  ;;  %v949_v7 = vadd.f32 %v2718_v37, %v836_v4  ;;  %v1211_v24 = vadd.f32 %v2755_v32, %v2876_v36 }
 0x22f   : > { %v1311_v16 = vpop.f32.mrf.mxu0 }
 0x230   : > { %v1095_v50 = vmax.f32 %v1050_v40, 0.0  ;;  %v1312_v14 = vadd.f32 %v1311_v16, %v1199_v42  ;;  %v1216_v25 = vpop.f32.mrf.mxu3 }
 0x232   : > { %v1425_v23 = vadd.f32 %v2829_v48, %v1312_v14  ;;  %1358 = vmatmul.f32.gmra.mxu0 %v1095_v50  ;;  %v839_v50 = vadd.f32 %v2662_v10, %v2652_v2 }
 0x234   : > { %1502 = vst [vmem:[%s2772_s14 + $0x48] sm:$0xff] %v1425_v23  ;;  %v1533_v38 = vadd.f32 %v1532_v11, %v1425_v23  ;;  %v1571_v17 = vmul.f32 %v1425_v23, %v1425_v23 }
 0x235   : > { %v1052_v56 = vpop.f32.mrf.mxu2 }
 0x236   : > { %v1602_v30 = vadd.f32 %v1601_v19, %v1571_v17  ;;  %v1053_v3 = vadd.f32 %v1052_v56, %v940_v26  ;;  %v2905_v49 = vpop.f32.mrf.mxu1  ;;  %v952_v26 = vadd.f32 %v2724_v59, %v839_v50  ;;  %v1214_v17 = vadd.f32 %v2755_v32, %v2889_v57 }
 0x237   : > { %v1314_v48 = vpop.f32.mrf.mxu0  ;;  %v1217_v57 = vadd.f32 %v2755_v32, %v1216_v25 }
 0x238   : > { %v1096_v6 = vmax.f32 %v1053_v3, 0.0  ;;  %v1315_v31 = vadd.f32 %v1314_v48, %v1202_v29  ;;  %v842_v48 = vadd.f32 %v2662_v10, %v2664_v12 }
 0x23a   : > { %v1428_v54 = vadd.f32 %v2842_v28, %v1315_v31  ;;  %1361 = vmatmul.f32.gmra.mxu0 %v1096_v6  ;;  %v833_v28 = vadd.f32 %v2662_v10, %v2640_v53  ;;  %v1219_v53 = vpop.f32.mrf.mxu3  ;;  %v955_v59 = vadd.f32 %v2732_v9, %v842_v48 }
 0x23c   : > { %1503 = vst [vmem:[%s2772_s14 + $0x50] sm:$0xff] %v1428_v54  ;;  %v1534_v63 = vadd.f32 %v1533_v38, %v1428_v54  ;;  %v1572_v45 = vmul.f32 %v1428_v54, %v1428_v54  ;;  %v946_v8 = vadd.f32 %v2712_v18, %v833_v28 }
 0x23d   : > { %v1055_v33 = vpop.f32.mrf.mxu2 }
 0x23e   : > { %v1603_v41 = vadd.f32 %v1602_v30, %v1572_v45  ;;  %v1056_v27 = vadd.f32 %v1055_v33, %v943_v0  ;;  %v1445_v11 = vpop.f32.mrf.mxu1 }
 0x23f   : > { %v1317_v13 = vpop.f32.mrf.mxu0 }
 0x240   : > { %v1097_v39 = vmax.f32 %v1056_v27, 0.0  ;;  %v1318_v35 = vadd.f32 %v1317_v13, %v1205_v60  ;;  %v1220_v13 = vadd.f32 %v2755_v32, %v1219_v53 }
 0x242   : > { %v1431_v62 = vadd.f32 %v2855_v20, %v1318_v35  ;;  %1364 = vmatmul.f32.gmra.mxu0 %v1097_v39  ;;  %v1222_v52 = vpop.f32.mrf.mxu3 }
 0x244   : > { %1504 = vst [vmem:[%s2772_s14 + $0x58] sm:$0xff] %v1431_v62  ;;  %v1535_v44 = vadd.f32 %v1534_v63, %v1431_v62  ;;  %v1573_v43 = vmul.f32 %v1431_v62, %v1431_v62 }
 0x245   : > { %v1058_v51 = vpop.f32.mrf.mxu2 }
 0x246   : > { %v1604_v15 = vadd.f32 %v1603_v41, %v1573_v43  ;;  %v1059_v47 = vadd.f32 %v1058_v51, %v946_v8  ;;  %v1448_v37 = vpop.f32.mrf.mxu1 }
 0x247   : > { %v1320_v55 = vpop.f32.mrf.mxu0 }
 0x248   : > { %v1098_v21 = vmax.f32 %v1059_v47, 0.0  ;;  %v1321_v20 = vadd.f32 %v1320_v55, %v1208_v46  ;;  %v1223_v46 = vadd.f32 %v2755_v32, %v1222_v52 }
 0x24a   : > { %v1434_v18 = vadd.f32 %v2868_v5, %v1321_v20  ;;  %1367 = vmatmul.f32.gmra.mxu0 %v1098_v21  ;;  %v1225_v2 = vpop.f32.mrf.mxu3 }
 0x24b   : > { %v1226_v21 = vadd.f32 %v2755_v32, %v1225_v2 }
 0x24c   : > { %1505 = vst [vmem:[%s2772_s14 + $0x60] sm:$0xff] %v1434_v18  ;;  %v1536_v42 = vadd.f32 %v1535_v44, %v1434_v18  ;;  %v1574_v1 = vmul.f32 %v1434_v18, %v1434_v18 }
 0x24d   : > { %v1061_v19 = vpop.f32.mrf.mxu2 }
 0x24e   : > { %v1605_v40 = vadd.f32 %v1604_v15, %v1574_v1  ;;  %v1062_v16 = vadd.f32 %v1061_v19, %v949_v7  ;;  %v1451_v63 = vpop.f32.mrf.mxu1 }
 0x24f   : > { %v1323_v58 = vpop.f32.mrf.mxu0 }
 0x250   : > { %v1099_v14 = vmax.f32 %v1062_v16, 0.0  ;;  %v1324_v5 = vadd.f32 %v1323_v58, %v1211_v24 }
 0x252   : > { %v1437_v23 = vadd.f32 %v2881_v22, %v1324_v5  ;;  %1370 = vmatmul.f32.gmra.mxu0 %v1099_v14  ;;  %v1228_v41 = vpop.f32.mrf.mxu3 }
 0x254   : > { %1506 = vst [vmem:[%s2772_s14 + $0x68] sm:$0xff] %v1437_v23  ;;  %v1537_v38 = vadd.f32 %v1536_v42, %v1437_v23  ;;  %v1575_v36 = vmul.f32 %v1437_v23, %v1437_v23 }
 0x255   : > { %v1064_v29 = vpop.f32.mrf.mxu2 }
 0x256   : > { %v1606_v56 = vadd.f32 %v1605_v40, %v1575_v36  ;;  %v1065_v30 = vadd.f32 %v1064_v29, %v952_v26  ;;  %v1454_v39 = vpop.f32.mrf.mxu1  ;;  %v1229_v40 = vadd.f32 %v2755_v32, %v1228_v41 }
 0x257   : > { %v1326_v3 = vpop.f32.mrf.mxu0 }
 0x258   : > { %v1100_v22 = vmax.f32 %v1065_v30, 0.0  ;;  %v1327_v34 = vadd.f32 %v1326_v3, %v1214_v17 }
 0x25a   : > { %v1440_v6 = vadd.f32 %v2894_v61, %v1327_v34  ;;  %1373 = vmatmul.f32.gmra.mxu0 %v1100_v22  ;;  %v1231_v8 = vpop.f32.mrf.mxu3 }
 0x25c   : > { %1507 = vst [vmem:[%s2772_s14 + $0x70] sm:$0xff] %v1440_v6  ;;  %v1538_v31 = vadd.f32 %v1537_v38, %v1440_v6  ;;  %v1576_v54 = vmul.f32 %v1440_v6, %v1440_v6 }
 0x25d   : > { %v1067_v0 = vpop.f32.mrf.mxu2 }
 0x25e   : > { %v1607_v45 = vadd.f32 %v1606_v56, %v1576_v54  ;;  %v1068_v60 = vadd.f32 %v1067_v0, %v955_v59  ;;  %v1457_v47 = vpop.f32.mrf.mxu1 }
 0x25f   : > { %v1329_v33 = vpop.f32.mrf.mxu0 }
 0x260   : > { %v1101_v10 = vmax.f32 %v1068_v60, 0.0  ;;  %v1330_v12 = vadd.f32 %v1329_v33, %v1217_v57 }
 0x262   : > { %v1443_v61 = vadd.f32 %v2905_v49, %v1330_v12  ;;  %1376 = vmatmul.f32.gmra.mxu0 %v1101_v10  ;;  %v1234_v20 = vpop.f32.mrf.mxu3 }
 0x263   : > { %v1235_v2 = vadd.f32 %v2755_v32, %v1234_v20 }
 0x264   : > { %1508 = vst [vmem:[%s2772_s14 + $0x78] sm:$0xff] %v1443_v61  ;;  %v1539_v27 = vadd.f32 %v1538_v31, %v1443_v61  ;;  %v1577_v9 = vmul.f32 %v1443_v61, %v1443_v61 }
 0x266   : > { %v1608_v28 = vadd.f32 %v1607_v45, %v1577_v9  ;;  %v1460_v1 = vpop.f32.mrf.mxu1 }
 0x267   : > { %v1332_v25 = vpop.f32.mrf.mxu0 }
 0x268   : > { %v1333_v35 = vadd.f32 %v1332_v25, %v1220_v13 }
 0x26a   : > { %v1446_v62 = vadd.f32 %v1445_v11, %v1333_v35  ;;  %v1237_v58 = vpop.f32.mrf.mxu3 }
 0x26b   : > { %v1238_v54 = vadd.f32 %v2755_v32, %v1237_v58 }
 0x26c   : > { %1509 = vst [vmem:[%s2772_s14 + $0x80] sm:$0xff] %v1446_v62  ;;  %v1540_v44 = vadd.f32 %v1539_v27, %v1446_v62  ;;  %v1578_v43 = vmul.f32 %v1446_v62, %v1446_v62 }
 0x26e   : > { %v1609_v49 = vadd.f32 %v1608_v28, %v1578_v43  ;;  %v1463_v26 = vpop.f32.mrf.mxu1 }
 0x26f   : > { %v1335_v51 = vpop.f32.mrf.mxu0 }
 0x270   : > { %v1336_v15 = vadd.f32 %v1335_v51, %v1223_v46 }
 0x272   : > { %v1449_v55 = vadd.f32 %v1448_v37, %v1336_v15  ;;  %v1232_v37 = vadd.f32 %v2755_v32, %v1231_v8  ;;  %v1240_v29 = vpop.f32.mrf.mxu3 }
 0x273   : > { %v1241_v60 = vadd.f32 %v2755_v32, %v1240_v29 }
 0x274   : > { %1510 = vst [vmem:[%s2772_s14 + $0x88] sm:$0xff] %v1449_v55  ;;  %v1541_v53 = vadd.f32 %v1540_v44, %v1449_v55  ;;  %v1579_v4 = vmul.f32 %v1449_v55, %v1449_v55 }
 0x276   : > { %v1610_v11 = vadd.f32 %v1609_v49, %v1579_v4  ;;  %v1466_v34 = vpop.f32.mrf.mxu1 }
 0x277   : > { %v1338_v18 = vpop.f32.mrf.mxu0 }
 0x278   : > { %v1339_v7 = vadd.f32 %v1338_v18, %v1226_v21 }
 0x27a   : > { %v1452_v42 = vadd.f32 %v1451_v63, %v1339_v7  ;;  %v1243_v31 = vpop.f32.mrf.mxu3 }
 0x27b   : > { %v1244_v27 = vadd.f32 %v2755_v32, %v1243_v31 }
 0x27c   : > { %1511 = vst [vmem:[%s2772_s14 + $0x90] sm:$0xff] %v1452_v42  ;;  %v1542_v24 = vadd.f32 %v1541_v53, %v1452_v42  ;;  %v1580_v19 = vmul.f32 %v1452_v42, %v1452_v42 }
 0x27e   : > { %v1611_v16 = vadd.f32 %v1610_v11, %v1580_v19  ;;  %v1469_v63 = vpop.f32.mrf.mxu1 }
 0x27f   : > { %v1341_v52 = vpop.f32.mrf.mxu0 }
 0x280   : > { %v1342_v50 = vadd.f32 %v1341_v52, %v1229_v40 }
 0x282   : > { %v1455_v14 = vadd.f32 %v1454_v39, %v1342_v50  ;;  %v1246_v33 = vpop.f32.mrf.mxu3 }
 0x283   : > { %v1247_v39 = vadd.f32 %v2755_v32, %v1246_v33 }
 0x284   : > { %1512 = vst [vmem:[%s2772_s14 + $0x98] sm:$0xff] %v1455_v14  ;;  %v1543_v5 = vadd.f32 %v1542_v24, %v1455_v14  ;;  %v1581_v23 = vmul.f32 %v1455_v14, %v1455_v14 }
 0x286   : > { %v1612_v38 = vadd.f32 %v1611_v16, %v1581_v23  ;;  %v1472_v61 = vpop.f32.mrf.mxu1 }
 0x287   : > { %v1344_v36 = vpop.f32.mrf.mxu0 }
 0x288   : > { %v1345_v17 = vadd.f32 %v1344_v36, %v1232_v37 }
 0x28a   : > { %v1458_v56 = vadd.f32 %v1457_v47, %v1345_v17  ;;  %v1249_v13 = vpop.f32.mrf.mxu3 }
 0x28b   : > { %v1250_v46 = vadd.f32 %v2755_v32, %v1249_v13 }
 0x28c   : > { %1513 = vst [vmem:[%s2772_s14 + $0xa0] sm:$0xff] %v1458_v56  ;;  %v1544_v30 = vadd.f32 %v1543_v5, %v1458_v56  ;;  %v1582_v3 = vmul.f32 %v1458_v56, %v1458_v56 }
 0x28e   : > { %v1613_v48 = vadd.f32 %v1612_v38, %v1582_v3  ;;  %v1475_v35 = vpop.f32.mrf.mxu1 }
 0x28f   : > { %v1347_v22 = vpop.f32.mrf.mxu0 }
 0x290   : > { %v1348_v6 = vadd.f32 %v1347_v22, %v1235_v2 }
 0x292   : > { %v1461_v59 = vadd.f32 %v1460_v1, %v1348_v6  ;;  %v1252_v44 = vpop.f32.mrf.mxu3 }
 0x293   : > { %v1253_v53 = vadd.f32 %v2755_v32, %v1252_v44 }
 0x294   : > { %1514 = vst [vmem:[%s2772_s14 + $0xa8] sm:$0xff] %v1461_v59  ;;  %v1583_v16 = vmul.f32 %v1461_v59, %v1461_v59  ;;  %v1545_v50 = vadd.f32 %v1544_v30, %v1461_v59 }
 0x296   : > { %v1478_v51 = vpop.f32.mrf.mxu1  ;;  %v1614_v23 = vadd.f32 %v1613_v48, %v1583_v16 }
 0x297   : > { %v1350_v57 = vpop.f32.mrf.mxu0 }
 0x298   : > { %v1351_v0 = vadd.f32 %v1350_v57, %v1238_v54 }
 0x29a   : > { %v1464_v45 = vadd.f32 %v1463_v26, %v1351_v0  ;;  %v1255_v55 = vpop.f32.mrf.mxu3 }
 0x29b   : > { %v1256_v18 = vadd.f32 %v2755_v32, %v1255_v55 }
 0x29c   : > { %1515 = vst [vmem:[%s2772_s14 + $0xb0] sm:$0xff] %v1464_v45  ;;  %v1584_v14 = vmul.f32 %v1464_v45, %v1464_v45  ;;  %v1546_v37 = vadd.f32 %v1545_v50, %v1464_v45 }
 0x29e   : > { %v1481_v20 = vpop.f32.mrf.mxu1  ;;  %v1615_v36 = vadd.f32 %v1614_v23, %v1584_v14 }
 0x29f   : > { %v1353_v10 = vpop.f32.mrf.mxu0 }
 0x2a0   : > { %v1354_v12 = vadd.f32 %v1353_v10, %v1241_v60 }
 0x2a2   : > { %v1467_v41 = vadd.f32 %v1466_v34, %v1354_v12  ;;  %v1258_v7 = vpop.f32.mrf.mxu3 }
 0x2a3   : > { %v1259_v40 = vadd.f32 %v2755_v32, %v1258_v7 }
 0x2a4   : > { %1516 = vst [vmem:[%s2772_s14 + $0xb8] sm:$0xff] %v1467_v41  ;;  %v1585_v26 = vmul.f32 %v1467_v41, %v1467_v41  ;;  %v1547_v17 = vadd.f32 %v1546_v37, %v1467_v41 }
 0x2a6   : > { %v1484_v19 = vpop.f32.mrf.mxu1  ;;  %v1616_v2 = vadd.f32 %v1615_v36, %v1585_v26 }
 0x2a7   : > { %v1356_v9 = vpop.f32.mrf.mxu0 }
 0x2a8   : > { %v1357_v28 = vadd.f32 %v1356_v9, %v1244_v27 }
 0x2aa   : > { %v1470_v25 = vadd.f32 %v1469_v63, %v1357_v28  ;;  %v1261_v58 = vpop.f32.mrf.mxu3 }
 0x2ab   : > { %v1262_v56 = vadd.f32 %v2755_v32, %v1261_v58 }
 0x2ac   : > { %1517 = vst [vmem:[%s2772_s14 + $0xc0] sm:$0xff] %v1470_v25  ;;  %v1586_v29 = vmul.f32 %v1470_v25, %v1470_v25  ;;  %v1548_v22 = vadd.f32 %v1547_v17, %v1470_v25 }
 0x2ae   : > { %v1487_v3 = vpop.f32.mrf.mxu1  ;;  %v1617_v30 = vadd.f32 %v1616_v2, %v1586_v29 }
 0x2af   : > { %v1359_v62 = vpop.f32.mrf.mxu0 }
 0x2b0   : > { %v1360_v8 = vadd.f32 %v1359_v62, %v1247_v39 }
 0x2b2   : > { %v1473_v43 = vadd.f32 %v1472_v61, %v1360_v8  ;;  %v1264_v54 = vpop.f32.mrf.mxu3 }
 0x2b3   : > { %v1265_v12 = vadd.f32 %v2755_v32, %v1264_v54 }
 0x2b4   : > { %1518 = vst [vmem:[%s2772_s14 + $0xc8] sm:$0xff] %v1473_v43  ;;  %v1587_v34 = vmul.f32 %v1473_v43, %v1473_v43  ;;  %v1549_v59 = vadd.f32 %v1548_v22, %v1473_v43 }
 0x2b6   : > { %v1618_v57 = vadd.f32 %v1617_v30, %v1587_v34  ;;  %v1490_v13 = vpop.f32.mrf.mxu1 }
 0x2b7   : > { %v1362_v49 = vpop.f32.mrf.mxu0 }
 0x2b8   : > { %v1363_v15 = vadd.f32 %v1362_v49, %v1250_v46 }
 0x2ba   : > { %v1476_v47 = vadd.f32 %v1475_v35, %v1363_v15 }
 0x2bc   : > { %1519 = vst [vmem:[%s2772_s14 + $0xd0] sm:$0xff] %v1476_v47  ;;  %v1588_v31 = vmul.f32 %v1476_v47, %v1476_v47  ;;  %v1550_v0 = vadd.f32 %v1549_v59, %v1476_v47 }
 0x2be   : > { %v1619_v60 = vadd.f32 %v1618_v57, %v1588_v31 }
 0x2bf   : > { %v1365_v4 = vpop.f32.mrf.mxu0 }
 0x2c0   : > { %v1366_v21 = vadd.f32 %v1365_v4, %v1253_v53 }
 0x2c2   : > { %v1479_v11 = vadd.f32 %v1478_v51, %v1366_v21 }
 0x2c4   : > { %1520 = vst [vmem:[%s2772_s14 + $0xd8] sm:$0xff] %v1479_v11  ;;  %v1589_v63 = vmul.f32 %v1479_v11, %v1479_v11  ;;  %v1551_v33 = vadd.f32 %v1550_v0, %v1479_v11 }
 0x2c6   : > { %v1620_v41 = vadd.f32 %v1619_v60, %v1589_v63 }
 0x2c7   : > { %v1368_v42 = vpop.f32.mrf.mxu0 }
 0x2c8   : > { %v1369_v1 = vadd.f32 %v1368_v42, %v1256_v18 }
 0x2ca   : > { %v1482_v24 = vadd.f32 %v1481_v20, %v1369_v1 }
 0x2cc   : > { %1521 = vst [vmem:[%s2772_s14 + $0xe0] sm:$0xff] %v1482_v24  ;;  %v1590_v10 = vmul.f32 %v1482_v24, %v1482_v24  ;;  %v1552_v61 = vadd.f32 %v1551_v33, %v1482_v24 }
 0x2ce   : > { %v1621_v28 = vadd.f32 %v1620_v41, %v1590_v10 }
 0x2cf   : > { %v1371_v52 = vpop.f32.mrf.mxu0 }
 0x2d0   : > { %v1372_v5 = vadd.f32 %v1371_v52, %v1259_v40 }
 0x2d2   : > { %v1485_v38 = vadd.f32 %v1484_v19, %v1372_v5 }
 0x2d4   : > { %1522 = vst [vmem:[%s2772_s14 + $0xe8] sm:$0xff] %v1485_v38  ;;  %v1591_v27 = vmul.f32 %v1485_v38, %v1485_v38  ;;  %v1553_v25 = vadd.f32 %v1552_v61, %v1485_v38 }
 0x2d6   : > { %v1622_v62 = vadd.f32 %v1621_v28, %v1591_v27 }
 0x2d7   : > { %v1374_v6 = vpop.f32.mrf.mxu0 }
 0x2d8   : > { %v1375_v48 = vadd.f32 %v1374_v6, %v1262_v56 }
 0x2da   : > { %v1488_v45 = vadd.f32 %v1487_v3, %v1375_v48 }
 0x2dc   : > { %1523 = vst [vmem:[%s2772_s14 + $0xf0] sm:$0xff] %v1488_v45  ;;  %v1592_v39 = vmul.f32 %v1488_v45, %v1488_v45  ;;  %v1554_v8 = vadd.f32 %v1553_v25, %v1488_v45 }
 0x2de   : > { %v1623_v32 = vadd.f32 %v1622_v62, %v1592_v39 }
 0x2df   : > { %v1377_v9 = vpop.f32.mrf.mxu0 }
 0x2e0   : > { %v1378_v35 = vadd.f32 %v1377_v9, %v1265_v12 }
 0x2e2   : > { %v1491_v44 = vadd.f32 %v1490_v13, %v1378_v35 }
 0x2e4   : > { %1524 = vst [vmem:[%s2772_s14 + $0xf8] sm:$0xff] %v1491_v44  ;;  %v1555_v43 = vadd.f32 %v1554_v8, %v1491_v44  ;;  %v1593_v46 = vmul.f32 %v1491_v44, %v1491_v44 }
 0x2e5   : > { %2210 = shalt.err (!%p2207_p0)
}
 0x2e6   : > { %s2312_s29 = smov 128   ;;  %s2313_s18 = smov 8   ;;  %v1556_v49 = vrot.slane %v1555_v43, 4  ;;  %v1624_v51 = vadd.f32 %v1623_v32, %v1593_v46  ;;  %vm1631_vm0 = vcmask 1040384  }
 0x2e7   : > { %1942 = dma.vmem_to_hbm [thread:$0]  (%p2439_p5), %s1656_s27, 4096, %s1658_s10, %s1635_s21, %s2312_s29, %s2312_s29, %s2313_s18  }
 0x2e8   : > { %v1557_v15 = vadd.f32 %v1556_v49, %v1555_v43  ;;  %v1625_v47 = vrot.slane %v1624_v51, 4  ;;  %s1884_s19 = sshll.u32 %s2501_s1, 1  ;;  %s1889_s11 = sshll.u32 %s2297_s30, 1 }
 0x2e9   : > { %s3064_s25 = sld [smem:[#allocation29_spill]]  ;;  %s499_s22 = scalar_lea.vmem [#allocation12], %s1884_s19 }
 0x2ea   : > { %v1558_v55 = vrot.slane %v1557_v15, 2  ;;  %v1626_v53 = vadd.f32 %v1625_v47, %v1624_v51  ;;  %s1673_s12 = sshll.u32 %s499_s22, 4  ;;  %s1640_s30 = scalar_lea.sflag [#allocation13], %s2501_s1  ;;  %s1674_s12 = int_to_ptr.vmem [resolvable:$true] %s1673_s12 }
 0x2ec   : > { %v1559_v4 = vadd.f32 %v1558_v55, %v1557_v15  ;;  %v1627_v21 = vrot.slane %v1626_v53, 2 }
 0x2ee   : > { %v1560_v20 = vrot.slane %v1559_v4, 1  ;;  %v1628_v11 = vadd.f32 %v1627_v21, %v1626_v53 }
 0x2ef   : > { %s1671_s14 = scalar_lea.hbm %s3064_s25, %s1889_s11  ;;  %s2231_s3 = scalar_lea.hbm %s3064_s25, 4 }
 0x2f0   : > { %v1629_v18 = vrot.slane %v1628_v11, 1  ;;  %s1675_s9 = sshll.u32 %s1671_s14, 4  ;;  %v1561_v7 = vadd.f32 %v1560_v20, %v1559_v4  ;;  %s1676_s9 = int_to_ptr.hbm [resolvable:$true] %s1675_s9 }
 0x2f1   : > { %s2225_s24 = sshra.s32 %s1676_s9, 4  ;;  %s2226_s24 = int_to_ptr.hbm [resolvable:$true] %s2225_s24 }
 0x2f2   : > { %v1630_v42 = vadd.f32 %v1629_v18, %v1628_v11  ;;  %s2227_s27 = scalar_lea.hbm %s2226_s24, 2  ;;  %p2232_p12 = scmp.lt.s32.totalorder %s2226_s24, %s3064_s25 }
 0x2f3   : > { %p2228_p3 = scmp.ne.s32.totalorder %s2226_s24, %s2227_s27  ;;  %p2233_p1 = scmp.lt.s32.totalorder %s2231_s3, %s2227_s27 }
 0x2f4   : > { %v1632_v1 = vsel %vm1631_vm0, %v1561_v7, %v1630_v42 }
 0x2f5   : > { %1633 = vst [vmem:[%s499_s22] sm:$0x3] %v1632_v1  ;;  %p2229_p7 = pnand %p2228_p3, %p2439_p5  ;;  %p2234_p2 = por %p2233_p1, %p2232_p12 }
 0x2f7   : > { %p2230_p9 = pneg %p2229_p7 }
 0x2f9   : > { %p2235_p4 = pnand %p2234_p2, %p2230_p9 }
 0x2fb   : > { %2238 = shalt.err (!%p2235_p4)
}
 0x2fc   : > { %1943 = dma.vmem_to_hbm [thread:$0]  (%p2439_p5), %s1674_s12, 32, %s1676_s9, %s1640_s30  }
 0x2fd PF: > { %s3065_s1 = sld [smem:[#allocation19_spill]]  ;;  %p1964_p8 = pnand %p1867_p11, %p2404_p6 }
 0x2fe   : > { %s3067_s16 = sld [smem:[#allocation22_spill]] }
 0x2ff   : > { %p1965_p10 = pneg %p1964_p8 }
 0x303   : > { %s1687_s17 = sand.u32 1, %s3065_s1  }
 0x304   : > { %s1688_s5 = scalar_lea.sflag [#allocation4], %s1687_s17 }
 0x305   : > { %2276 = dma.done.wait (%p1965_p10), %s1688_s5, 4096  }
 0x306   : > { %2278 = vsyncadd (%p1965_p10), %s1688_s5, 4294963200  ;;  %s1698_s29 = scalar_lea.sflag [#allocation13], %s1687_s17 }
 0x307   : > { %2280 = dma.done.wait (%p1965_p10), %s1698_s29, 32  }
 0x308   : > { %2282 = vsyncadd (%p1965_p10), %s1698_s29, 4294967264  ;;  %s32_s10 = sadd.s32 1, %s3067_s16   ;;  %s3068_s26 = sld [smem:[#allocation20_spill]] }
 0x309   : > { %p29_p13 = scmp.ge.s32.totalorder %s32_s10, 4   ;;  %s3069_s29 = sld [smem:[#allocation25_spill]] }
 0x30a   : > { %s3070_s30 = sld [smem:[#allocation21_spill]]  ;;  %s3072_s27 = smov %s2289_s28 }
 0x30b   : > { %s3071_s9 = sld [smem:[#allocation24_spill]]  ;;  %31 = sbr.rel (!%p29_p13) target bundleno = 16 (0x10), region = 142 }
 0x30e   : > { %s3073_s28 = smov %s3068_s26 }
 0x310   :  { %1704 = vsyncpa [#allocation3], 1 }
 0x311   :  { %1706 = vsyncpa [#allocation3 + $0x1], 1 }
 0x312   :  { %1707 = vsyncpa [#allocation6], 1 }
 0x313   :  { %1709 = vsyncpa [#allocation6 + $0x1], 1 }
 0x314   :  { %1710 = vsyncpa [#allocation9], 1 }
 0x315   :  { %1711 = vsyncpa [#allocation4], 1 }
 0x316   :  { %1713 = vsyncpa [#allocation4 + $0x1], 1 }
 0x317   :  { %1714 = vsyncpa [#allocation13], 1 }
 0x318   :  { %1716 = vsyncpa [#allocation13 + $0x1], 1 }

</bundles_post_ra>
